<compile_context>
chip_gen: v5e
topology: v5e:2x2
jax: 0.10.0
libtpu: 0.0.40
codegen_flags: <defaults>
</compile_context>

<pallas_src>
import jax
import jax.numpy as jnp
from jax.experimental import pallas as pl
from jax.experimental.pallas import tpu as pltpu

BN_EPS = 1e-5
LANE = 128
SUBLANE = 8


def _round_up(x, m):
    return (x + m - 1) // m * m


# ----------------------------------------------------------------------------
# Fused Pallas kernel
# ----------------------------------------------------------------------------
def _make_fused_kernel(*, num_gnn_layers, num_dense_blocks, num_vertices,
                       gnn_dim, pair_feat_dim, hidden_dim, pair_tile):
    """Build the fused forward kernel with the static layer structure baked in.

    Refs (inputs, output, scratch):
      gf0_ref : [N, D]            initial graph features (node feats ++ embed)
      a_ref   : [N, N]            row-normalized weighted adjacency
      vp_ref  : [TP, 2] int32     vertex pair indices for this tile
      pf_ref  : [TP, F]           pairwise features for this tile
      sw_ref  : [L, 2, D, D] bf16 SAGE weights (0 = W_self, 1 = W_neigh)
      sss_ref : [L, 2, 1, D]      folded SAGE BN (0 = scale, 1 = shift+bias)
      dss_ref : [B, 2, 1, Cpad]   dense BN (padded; bias column shift == 1)
      dw_ref  : [B, Cpad, 128] bf16  dense weights (bias folded into a row)
      out_ref : [TP, 128]         lane-dense predictions (column 0 is real)
      gf_ref  : [N, D]  scratch   graph features, persistent across tiles
      hid_ref : [TP, Cpad] scratch fixed-width dense-head hidden buffer
    """
    D = gnn_dim
    F = pair_feat_dim
    H = hidden_dim
    base = 2 * D + F

    def kernel(gf0_ref, a_ref, vp_ref, pf_ref,
               sw_ref, sss_ref, dss_ref, dw_ref,
               out_ref, gf_ref, hid_ref):
        # ---- Stage 1 (first tile only): GNN stack into persistent scratch --
        @pl.when(pl.program_id(0) == 0)
        def _():
            gf = gf0_ref[...]
            a = a_ref[...]
            for i in range(num_gnn_layers):
                neigh = jnp.dot(a, gf, preferred_element_type=jnp.float32)
                lin = (jnp.dot(gf.astype(jnp.bfloat16), sw_ref[i, 0, :, :],
                               preferred_element_type=jnp.float32)
                       + jnp.dot(neigh.astype(jnp.bfloat16), sw_ref[i, 1, :, :],
                                 preferred_element_type=jnp.float32))
                act = jnp.maximum(lin * sss_ref[i, 0, :, :]
                                  + sss_ref[i, 1, :, :], 0.0)
                gf = act if i == 0 else gf + act            # residual
            gf_ref[...] = gf

        # ---- Stage 2 (every tile): pair gather + DenseNet-style head -------
        gf = gf_ref[...]
        vp = vp_ref[...]
        col = jax.lax.broadcasted_iota(jnp.int32, (pair_tile, num_vertices), 1)
        u_oh = (col == vp[:, 0:1]).astype(jnp.float32)
        v_oh = (col == vp[:, 1:2]).astype(jnp.float32)
        h_u = jnp.dot(u_oh, gf, preferred_element_type=jnp.float32)
        h_v = jnp.dot(v_oh, gf, preferred_element_type=jnp.float32)

        # Fixed-width padded hidden buffer; pieces stored at static offsets.
        hid_ref[...] = jnp.zeros_like(hid_ref)
        hid_ref[:, 0:D] = h_u
        hid_ref[:, D:2 * D] = h_v
        hid_ref[:, 2 * D:2 * D + F] = pf_ref[...]

        # BN -> ReLU -> (Dropout=id) -> Linear, full padded width every block.
        # Padded scale/shift entries are 0 => ReLU gives 0 => zero weight rows
        # contribute nothing; the "bias column" has shift==1 so its weight row
        # carries the Linear bias.
        for i in range(num_dense_blocks):
            hidden = hid_ref[...]
            act = jnp.maximum(hidden * dss_ref[i, 0, :, :]
                              + dss_ref[i, 1, :, :], 0.0)
            out = jnp.dot(act.astype(jnp.bfloat16), dw_ref[i, :, :],
                          preferred_element_type=jnp.float32)
            if i + 1 < num_dense_blocks:
                off = base + i * H
                hid_ref[:, off:off + H] = out[:, :H]
            else:
                out_ref[...] = out                          # lane-dense store

    return kernel


def _padded_bytes(shape, itemsize):
    if len(shape) == 0:
        return itemsize
    if len(shape) == 1:
        return _round_up(shape[0], LANE) * itemsize
    lead = 1
    for d in shape[:-2]:
        lead *= int(d)
    return (lead * _round_up(int(shape[-2]), SUBLANE)
            * _round_up(int(shape[-1]), LANE) * itemsize)


def _vmem_limit_bytes(arrays, scratch):
    total = sum(_padded_bytes(a.shape, a.dtype.itemsize) for a in arrays)
    total += sum(_padded_bytes(s, isz) for s, isz in scratch)
    # x2 for double-buffered pipeline stages + headroom; floor well under every
    # generation's physical VMEM (v7x: 64 MiB).
    return int(max(8 * 1024 * 1024, 2 * total + (2 << 20)))


def _const_index_map(ndim):
    zeros = (0,) * ndim
    return lambda i: zeros


def _const_spec(arr):
    return pl.BlockSpec(tuple(arr.shape), _const_index_map(arr.ndim))


def fused_forward(gf0, a_norm, vertex_pairs, pairwise_features,
                  sage_w, sage_ss, dense_ss, dense_w,
                  *, hidden_dim, pair_tile=None):
    num_vertices, gnn_dim = gf0.shape
    num_pairs, pair_feat_dim = pairwise_features.shape
    num_gnn_layers = sage_w.shape[0]
    num_dense_blocks = dense_w.shape[0]
    c_pad = dense_w.shape[1]
    h_pad = dense_w.shape[2]

    if pair_tile is None:
        pair_tile = min(128, _round_up(num_pairs, SUBLANE))
    pair_tile = _round_up(int(pair_tile), SUBLANE)
    p_pad = _round_up(max(num_pairs, pair_tile), pair_tile)
    num_tiles = p_pad // pair_tile

    # Pad pair inputs to a whole number of tiles (padded rows are discarded).
    vp = jnp.zeros((p_pad, 2), jnp.int32).at[:num_pairs].set(
        vertex_pairs.astype(jnp.int32))
    pf = jnp.zeros((p_pad, pair_feat_dim), jnp.float32).at[:num_pairs].set(
        pairwise_features)

    kernel = _make_fused_kernel(
        num_gnn_layers=num_gnn_layers, num_dense_blocks=num_dense_blocks,
        num_vertices=num_vertices, gnn_dim=gnn_dim,
        pair_feat_dim=pair_feat_dim, hidden_dim=hidden_dim,
        pair_tile=pair_tile)

    in_specs = [
        _const_spec(gf0),
        _const_spec(a_norm),
        pl.BlockSpec((pair_tile, 2), lambda i: (i, 0)),
        pl.BlockSpec((pair_tile, pair_feat_dim), lambda i: (i, 0)),
        _const_spec(sage_w),
        _const_spec(sage_ss),
        _const_spec(dense_ss),
        _const_spec(dense_w),
    ]
    out_spec = pl.BlockSpec((pair_tile, h_pad), lambda i: (i, 0))

    vmem_limit = _vmem_limit_bytes(
        [gf0, a_norm, vp, pf, sage_w, sage_ss, dense_ss, dense_w],
        [((num_vertices, gnn_dim), 4), ((pair_tile, c_pad), 4),
         ((pair_tile, h_pad), 4)])

    preds = pl.pallas_call(
        kernel,
        grid=(num_tiles,),
        in_specs=in_specs,
        out_specs=out_spec,
        out_shape=jax.ShapeDtypeStruct((p_pad, h_pad), jnp.float32),
        scratch_shapes=[pltpu.VMEM((num_vertices, gnn_dim), jnp.float32),
                        pltpu.VMEM((pair_tile, c_pad), jnp.float32)],
        compiler_params=pltpu.CompilerParams(
            dimension_semantics=("arbitrary",),
            vmem_limit_bytes=vmem_limit),
    )(gf0, a_norm, vp, pf, sage_w, sage_ss, dense_ss, dense_w)
    return preds[:num_pairs, 0]


# ----------------------------------------------------------------------------
# Deterministic parameter construction (synthetic; no checkpoint load)
# ----------------------------------------------------------------------------
def _linear_params(key, in_f, out_f):
    k1, k2 = jax.random.split(key)
    bound = 1.0 / (in_f ** 0.5)
    w = jax.random.uniform(k1, (in_f, out_f), jnp.float32, -bound, bound)
    b = jax.random.uniform(k2, (1, out_f), jnp.float32, -bound, bound)
    return w, b


def _bn_params(key, dim):
    k1, k2, k3, k4 = jax.random.split(key, 4)
    return dict(
        gamma=jax.random.uniform(k1, (1, dim), jnp.float32, 0.5, 1.5),
        beta=jax.random.uniform(k2, (1, dim), jnp.float32, -0.1, 0.1),
        mean=jax.random.uniform(k3, (1, dim), jnp.float32, -0.1, 0.1),
        var=jax.random.uniform(k4, (1, dim), jnp.float32, 0.5, 1.5))


def _fold_bn(bn):
    scale = bn["gamma"] / jnp.sqrt(bn["var"] + BN_EPS)
    shift = bn["beta"] - bn["mean"] * scale
    return scale, shift


def build_params(key, num_vertices, num_node_features, embedding_dim,
                 num_pairwise_features, dnn_hidden_dim):
    gnn_dim = num_node_features + embedding_dim
    keys = jax.random.split(key, 16)

    raw = {"sage": [], "dense": []}
    raw["embedding"] = jax.random.normal(
        keys[0], (num_vertices, embedding_dim), jnp.float32) * 0.1

    # Three SAGEConv layers (+ BN): keep W_self / W_neigh separate, fold the
    # conv bias into the BN shift, store weights in bf16.
    sage_w, sage_ss = [], []
    for i in range(3):
        ka, kb, kc = jax.random.split(keys[1 + i], 3)
        w_self, bias = _linear_params(ka, gnn_dim, gnn_dim)
        w_neigh, _ = _linear_params(kb, gnn_dim, gnn_dim)
        bn = _bn_params(kc, gnn_dim)
        raw["sage"].append(dict(w_self=w_self, w_neigh=w_neigh, bias=bias, **bn))
        scale, shift = _fold_bn(bn)
        sage_w.append(jnp.stack([w_self, w_neigh]))              # [2, D, D]
        sage_ss.append(jnp.stack([scale, shift + bias * scale]))  # [2, 1, D]

    # Five DenseBlocks: zero-pad to a common lane-aligned width; the Linear
    # bias rides in a spare padded column whose (scale, shift) = (0, 1).
    base = gnn_dim * 2 + num_pairwise_features
    in_dims = tuple(base + dnn_hidden_dim * i for i in range(5))
    out_dims = (dnn_hidden_dim,) * 4 + (1,)
    cmax = in_dims[-1]
    bias_col = cmax                          # first unused padded column
    c_pad = _round_up(cmax + 1, LANE)        # e.g. 168 -> 256 lanes
    h_pad = LANE                             # lane-dense block outputs

    d_ss, d_w = [], []
    for i, (cin, cout) in enumerate(zip(in_dims, out_dims)):
        ka, kb = jax.random.split(keys[8 + i])
        bn = _bn_params(ka, cin)
        w, b = _linear_params(kb, cin, cout)
        raw["dense"].append(dict(w=w, b=b, **bn))
        scale, shift = _fold_bn(bn)
        scale_p = jnp.zeros((1, c_pad), jnp.float32).at[:, :cin].set(scale)
        shift_p = jnp.zeros((1, c_pad), jnp.float32).at[:, :cin].set(shift)
        shift_p = shift_p.at[:, bias_col].set(1.0)   # relu(0*x + 1) == 1
        w_p = jnp.zeros((c_pad, h_pad), jnp.float32)
        w_p = w_p.at[:cin, :cout].set(w)
        w_p = w_p.at[bias_col, :cout].set(b[0])      # bias folded into weights
        d_ss.append(jnp.stack([scale_p, shift_p]))   # [2, 1, Cpad]
        d_w.append(w_p)                              # [Cpad, Hpad]

    packed = dict(
        embedding=raw["embedding"],
        sage_w=jnp.stack(sage_w).astype(jnp.bfloat16),    # [3, 2, D, D]
        sage_ss=jnp.stack(sage_ss),                        # [3, 2, 1, D]
        dense_ss=jnp.stack(d_ss),                          # [5, 2, 1, Cpad]
        dense_w=jnp.stack(d_w).astype(jnp.bfloat16))       # [5, Cpad, 128]
    return packed, raw


# ----------------------------------------------------------------------------
# Forward pass (thin host wrapper: feature concat + pad + one kernel call)
# ----------------------------------------------------------------------------
def model_forward(packed, dnn_hidden_dim, a_norm, node_features, vertex_pairs,
                  pairwise_features, pair_tile=None):
    gf0 = jnp.concatenate([node_features, packed["embedding"]], axis=-1)
    return fused_forward(gf0, a_norm, vertex_pairs, pairwise_features,
                         packed["sage_w"], packed["sage_ss"],
                         packed["dense_ss"], packed["dense_w"],
                         hidden_dim=dnn_hidden_dim, pair_tile=pair_tile)


model_forward_jit = jax.jit(model_forward, static_argnums=(1, 6))


# ----------------------------------------------------------------------------
# Pure-JAX reference (unfolded f32 parameters) for a sanity check
# ----------------------------------------------------------------------------
def reference_forward(raw, a_norm, node_features, vertex_pairs,
                      pairwise_features):
    hi = jax.lax.Precision.HIGHEST
    mm = lambda x, y: jnp.dot(x, y, precision=hi)
    gf = jnp.concatenate([node_features, raw["embedding"]], axis=-1)
    for i, lyr in enumerate(raw["sage"]):
        neigh = mm(a_norm, gf)
        lin = mm(gf, lyr["w_self"]) + mm(neigh, lyr["w_neigh"]) + lyr["bias"]
        bn = ((lin - lyr["mean"]) / jnp.sqrt(lyr["var"] + BN_EPS)
              * lyr["gamma"] + lyr["beta"])
        act = jnp.maximum(bn, 0.0)
        gf = act if i == 0 else gf + act
    hidden = jnp.concatenate([gf[vertex_pairs[:, 0]], gf[vertex_pairs[:, 1]],
                              pairwise_features], axis=1)
    for i, blk in enumerate(raw["dense"]):
        bn = ((hidden - blk["mean"]) / jnp.sqrt(blk["var"] + BN_EPS)
              * blk["gamma"] + blk["beta"])
        act = jnp.maximum(bn, 0.0)
        out = mm(act, blk["w"]) + blk["b"]
        if i + 1 < len(raw["dense"]):
            hidden = jnp.concatenate([hidden, out], axis=1)
        else:
            return out[:, 0]


# ----------------------------------------------------------------------------
# Main
# ----------------------------------------------------------------------------
if __name__ == "__main__":
    NUM_VERTICES = 32
    NUM_NODE_FEATURES = 8
    EMBEDDING_DIM = 8
    NUM_PAIRWISE_FEATURES = 8
    DNN_HIDDEN_DIM = 32
    NUM_PAIRS = 16
    PAIR_TILE = 8          # -> grid of 2 pair tiles (exercises the pipeline)

    key = jax.random.PRNGKey(0)
    k_param, k_nf, k_adjm, k_adjw, k_pairs, k_pf = jax.random.split(key, 6)

    packed, raw = build_params(
        k_param, NUM_VERTICES, NUM_NODE_FEATURES, EMBEDDING_DIM,
        NUM_PAIRWISE_FEATURES, DNN_HIDDEN_DIM)

    # Synthetic weighted graph -> dense row-normalized adjacency.
    edge_mask = (jax.random.uniform(k_adjm, (NUM_VERTICES, NUM_VERTICES))
                 < 0.3).astype(jnp.float32)
    edge_mask = jnp.maximum(edge_mask, jnp.eye(NUM_VERTICES))  # self loops
    edge_w = jax.random.uniform(k_adjw, (NUM_VERTICES, NUM_VERTICES),
                                jnp.float32, 0.1, 1.0)
    in_deg = jnp.clip(jnp.sum(edge_mask, axis=1, keepdims=True), 1.0, None)
    a_norm = (edge_mask * edge_w) / in_deg  # mean aggregation matrix

    node_features = jax.random.normal(
        k_nf, (NUM_VERTICES, NUM_NODE_FEATURES), jnp.float32)
    vertex_pairs = jax.random.randint(
        k_pairs, (NUM_PAIRS, 2), 0, NUM_VERTICES, jnp.int32)
    pairwise_features = jax.random.normal(
        k_pf, (NUM_PAIRS, NUM_PAIRWISE_FEATURES), jnp.float32)

    preds = model_forward_jit(packed, DNN_HIDDEN_DIM, a_norm, node_features,
                              vertex_pairs, pairwise_features, PAIR_TILE)
    preds = jax.block_until_ready(preds)
    assert preds.shape == (NUM_PAIRS,)

    # Sanity check against a pure-JAX f32/HIGHEST reference. The kernel stores
    # its weights in bf16 (deliberate, per perf review) and feeds the MXU bf16
    # operands with f32 accumulation, so allow a correspondingly loose
    # tolerance — structural bugs produce errors orders of magnitude larger.
    ref = reference_forward(raw, a_norm, node_features, vertex_pairs,
                            pairwise_features)
    max_err = float(jnp.max(jnp.abs(preds - ref)))
    tol = 1e-1 * (1.0 + float(jnp.max(jnp.abs(ref))))
    assert max_err < tol, f"mismatch vs reference: {max_err} >= {tol}"

    print("KERNEL_OK")
</pallas_src>

<mosaic_0001>
module attributes {stable_mosaic.version = 11 : i64} {
  func.func @kernel(%arg0: i32, %arg1: memref<32x16xf32, #tpu.memory_space<vmem>>, %arg2: memref<32x32xf32, #tpu.memory_space<vmem>>, %arg3: memref<8x2xi32, #tpu.memory_space<vmem>>, %arg4: memref<8x8xf32, #tpu.memory_space<vmem>>, %arg5: memref<3x2x16x16xbf16, #tpu.memory_space<vmem>>, %arg6: memref<3x2x1x16xf32, #tpu.memory_space<vmem>>, %arg7: memref<5x2x1x256xf32, #tpu.memory_space<vmem>>, %arg8: memref<5x256x128xbf16, #tpu.memory_space<vmem>>, %arg9: memref<8x128xf32, #tpu.memory_space<vmem>>, %arg10: memref<32x16xf32, #tpu.memory_space<vmem>>, %arg11: memref<8x256xf32, #tpu.memory_space<vmem>>) attributes {dimension_semantics = [#tpu.dimension_semantics<arbitrary>], iteration_bounds = array<i64: 2>, scalar_prefetch = 0 : i64, scratch_operands = 2 : i64, tpu.core_type = #tpu.core_type<tc>, window_params = [{pipeline_mode = #tpu.pipeline_mode<synchronous>, transform_indices = @transform_0, window_bounds = array<i64: 32, 16>}, {pipeline_mode = #tpu.pipeline_mode<synchronous>, transform_indices = @transform_1, window_bounds = array<i64: 32, 32>}, {transform_indices = @transform_2, window_bounds = array<i64: 8, 2>}, {transform_indices = @transform_3, window_bounds = array<i64: 8, 8>}, {pipeline_mode = #tpu.pipeline_mode<synchronous>, transform_indices = @transform_4, window_bounds = array<i64: 3, 2, 16, 16>}, {pipeline_mode = #tpu.pipeline_mode<synchronous>, transform_indices = @transform_5, window_bounds = array<i64: 3, 2, 1, 16>}, {pipeline_mode = #tpu.pipeline_mode<synchronous>, transform_indices = @transform_6, window_bounds = array<i64: 5, 2, 1, 256>}, {pipeline_mode = #tpu.pipeline_mode<synchronous>, transform_indices = @transform_7, window_bounds = array<i64: 5, 256, 128>}, {transform_indices = @transform_8, window_bounds = array<i64: 8, 128>}]} {
    %c0_i32 = arith.constant 0 : i32
    %0 = arith.cmpi eq, %arg0, %c0_i32 : i32
    %1 = arith.extui %0 : i1 to i32
    %c0_i32_0 = arith.constant 0 : i32
    %2 = arith.cmpi ne, %1, %c0_i32_0 : i32
    scf.if %2 {
      %c0_91 = arith.constant 0 : index
      %c0_92 = arith.constant 0 : index
      %108 = vector.load %arg1[%c0_91, %c0_92] : memref<32x16xf32, #tpu.memory_space<vmem>>, vector<32x16xf32>
      %c0_93 = arith.constant 0 : index
      %c0_94 = arith.constant 0 : index
      %109 = vector.load %arg2[%c0_93, %c0_94] : memref<32x32xf32, #tpu.memory_space<vmem>>, vector<32x32xf32>
      %cst_95 = arith.constant dense<0.000000e+00> : vector<32x16xf32>
      %110 = tpu.matmul %109, %108, %cst_95 {dimension_numbers = #tpu.dot_dimension_numbers<[1], [0], [0], [1], [0, 0, 1, 1], [], []>} : vector<32x32xf32>, vector<32x16xf32>, vector<32x16xf32> -> vector<32x16xf32>
      %111 = arith.truncf %108 : vector<32x16xf32> to vector<32x16xbf16>
      %c0_96 = arith.constant 0 : index
      %c0_97 = arith.constant 0 : index
      %c0_98 = arith.constant 0 : index
      %c0_99 = arith.constant 0 : index
      %112 = vector.load %arg5[%c0_96, %c0_97, %c0_98, %c0_99] : memref<3x2x16x16xbf16, #tpu.memory_space<vmem>>, vector<1x1x16x16xbf16>
      %113 = vector.shape_cast %112 : vector<1x1x16x16xbf16> to vector<16x16xbf16>
      %cst_100 = arith.constant dense<0.000000e+00> : vector<32x16xf32>
      %114 = tpu.matmul %111, %113, %cst_100 {dimension_numbers = #tpu.dot_dimension_numbers<[1], [0], [0], [1], [0, 0, 1, 1], [], []>} : vector<32x16xbf16>, vector<16x16xbf16>, vector<32x16xf32> -> vector<32x16xf32>
      %115 = arith.truncf %110 : vector<32x16xf32> to vector<32x16xbf16>
      %c0_101 = arith.constant 0 : index
      %c1_102 = arith.constant 1 : index
      %c0_103 = arith.constant 0 : index
      %c0_104 = arith.constant 0 : index
      %116 = vector.load %arg5[%c0_101, %c1_102, %c0_103, %c0_104] : memref<3x2x16x16xbf16, #tpu.memory_space<vmem>>, vector<1x1x16x16xbf16>
      %117 = vector.shape_cast %116 : vector<1x1x16x16xbf16> to vector<16x16xbf16>
      %cst_105 = arith.constant dense<0.000000e+00> : vector<32x16xf32>
      %118 = tpu.matmul %115, %117, %cst_105 {dimension_numbers = #tpu.dot_dimension_numbers<[1], [0], [0], [1], [0, 0, 1, 1], [], []>} : vector<32x16xbf16>, vector<16x16xbf16>, vector<32x16xf32> -> vector<32x16xf32>
      %119 = arith.addf %114, %118 : vector<32x16xf32>
      %c0_106 = arith.constant 0 : index
      %c0_107 = arith.constant 0 : index
      %c0_108 = arith.constant 0 : index
      %c0_109 = arith.constant 0 : index
      %120 = vector.load %arg6[%c0_106, %c0_107, %c0_108, %c0_109] : memref<3x2x1x16xf32, #tpu.memory_space<vmem>>, vector<1x1x1x16xf32>
      %121 = vector.shape_cast %120 : vector<1x1x1x16xf32> to vector<1x16xf32>
      %122 = vector.broadcast %121 : vector<1x16xf32> to vector<32x16xf32>
      %123 = arith.mulf %119, %122 : vector<32x16xf32>
      %c0_110 = arith.constant 0 : index
      %c1_111 = arith.constant 1 : index
      %c0_112 = arith.constant 0 : index
      %c0_113 = arith.constant 0 : index
      %124 = vector.load %arg6[%c0_110, %c1_111, %c0_112, %c0_113] : memref<3x2x1x16xf32, #tpu.memory_space<vmem>>, vector<1x1x1x16xf32>
      %125 = vector.shape_cast %124 : vector<1x1x1x16xf32> to vector<1x16xf32>
      %126 = vector.broadcast %125 : vector<1x16xf32> to vector<32x16xf32>
      %127 = arith.addf %123, %126 : vector<32x16xf32>
      %cst_114 = arith.constant 0.000000e+00 : f32
      %128 = vector.broadcast %cst_114 : f32 to vector<32x16xf32>
      %129 = arith.maximumf %127, %128 : vector<32x16xf32>
      %cst_115 = arith.constant dense<0.000000e+00> : vector<32x16xf32>
      %130 = tpu.matmul %109, %129, %cst_115 {dimension_numbers = #tpu.dot_dimension_numbers<[1], [0], [0], [1], [0, 0, 1, 1], [], []>} : vector<32x32xf32>, vector<32x16xf32>, vector<32x16xf32> -> vector<32x16xf32>
      %131 = arith.truncf %129 : vector<32x16xf32> to vector<32x16xbf16>
      %c1_116 = arith.constant 1 : index
      %c0_117 = arith.constant 0 : index
      %c0_118 = arith.constant 0 : index
      %c0_119 = arith.constant 0 : index
      %132 = vector.load %arg5[%c1_116, %c0_117, %c0_118, %c0_119] : memref<3x2x16x16xbf16, #tpu.memory_space<vmem>>, vector<1x1x16x16xbf16>
      %133 = vector.shape_cast %132 : vector<1x1x16x16xbf16> to vector<16x16xbf16>
      %cst_120 = arith.constant dense<0.000000e+00> : vector<32x16xf32>
      %134 = tpu.matmul %131, %133, %cst_120 {dimension_numbers = #tpu.dot_dimension_numbers<[1], [0], [0], [1], [0, 0, 1, 1], [], []>} : vector<32x16xbf16>, vector<16x16xbf16>, vector<32x16xf32> -> vector<32x16xf32>
      %135 = arith.truncf %130 : vector<32x16xf32> to vector<32x16xbf16>
      %c1_121 = arith.constant 1 : index
      %c1_122 = arith.constant 1 : index
      %c0_123 = arith.constant 0 : index
      %c0_124 = arith.constant 0 : index
      %136 = vector.load %arg5[%c1_121, %c1_122, %c0_123, %c0_124] : memref<3x2x16x16xbf16, #tpu.memory_space<vmem>>, vector<1x1x16x16xbf16>
      %137 = vector.shape_cast %136 : vector<1x1x16x16xbf16> to vector<16x16xbf16>
      %cst_125 = arith.constant dense<0.000000e+00> : vector<32x16xf32>
      %138 = tpu.matmul %135, %137, %cst_125 {dimension_numbers = #tpu.dot_dimension_numbers<[1], [0], [0], [1], [0, 0, 1, 1], [], []>} : vector<32x16xbf16>, vector<16x16xbf16>, vector<32x16xf32> -> vector<32x16xf32>
      %139 = arith.addf %134, %138 : vector<32x16xf32>
      %c1_126 = arith.constant 1 : index
      %c0_127 = arith.constant 0 : index
      %c0_128 = arith.constant 0 : index
      %c0_129 = arith.constant 0 : index
      %140 = vector.load %arg6[%c1_126, %c0_127, %c0_128, %c0_129] : memref<3x2x1x16xf32, #tpu.memory_space<vmem>>, vector<1x1x1x16xf32>
      %141 = vector.shape_cast %140 : vector<1x1x1x16xf32> to vector<1x16xf32>
      %142 = vector.broadcast %141 : vector<1x16xf32> to vector<32x16xf32>
      %143 = arith.mulf %139, %142 : vector<32x16xf32>
      %c1_130 = arith.constant 1 : index
      %c1_131 = arith.constant 1 : index
      %c0_132 = arith.constant 0 : index
      %c0_133 = arith.constant 0 : index
      %144 = vector.load %arg6[%c1_130, %c1_131, %c0_132, %c0_133] : memref<3x2x1x16xf32, #tpu.memory_space<vmem>>, vector<1x1x1x16xf32>
      %145 = vector.shape_cast %144 : vector<1x1x1x16xf32> to vector<1x16xf32>
      %146 = vector.broadcast %145 : vector<1x16xf32> to vector<32x16xf32>
      %147 = arith.addf %143, %146 : vector<32x16xf32>
      %cst_134 = arith.constant 0.000000e+00 : f32
      %148 = vector.broadcast %cst_134 : f32 to vector<32x16xf32>
      %149 = arith.maximumf %147, %148 : vector<32x16xf32>
      %150 = arith.addf %129, %149 : vector<32x16xf32>
      %cst_135 = arith.constant dense<0.000000e+00> : vector<32x16xf32>
      %151 = tpu.matmul %109, %150, %cst_135 {dimension_numbers = #tpu.dot_dimension_numbers<[1], [0], [0], [1], [0, 0, 1, 1], [], []>} : vector<32x32xf32>, vector<32x16xf32>, vector<32x16xf32> -> vector<32x16xf32>
      %152 = arith.truncf %150 : vector<32x16xf32> to vector<32x16xbf16>
      %c2_136 = arith.constant 2 : index
      %c0_137 = arith.constant 0 : index
      %c0_138 = arith.constant 0 : index
      %c0_139 = arith.constant 0 : index
      %153 = vector.load %arg5[%c2_136, %c0_137, %c0_138, %c0_139] : memref<3x2x16x16xbf16, #tpu.memory_space<vmem>>, vector<1x1x16x16xbf16>
      %154 = vector.shape_cast %153 : vector<1x1x16x16xbf16> to vector<16x16xbf16>
      %cst_140 = arith.constant dense<0.000000e+00> : vector<32x16xf32>
      %155 = tpu.matmul %152, %154, %cst_140 {dimension_numbers = #tpu.dot_dimension_numbers<[1], [0], [0], [1], [0, 0, 1, 1], [], []>} : vector<32x16xbf16>, vector<16x16xbf16>, vector<32x16xf32> -> vector<32x16xf32>
      %156 = arith.truncf %151 : vector<32x16xf32> to vector<32x16xbf16>
      %c2_141 = arith.constant 2 : index
      %c1_142 = arith.constant 1 : index
      %c0_143 = arith.constant 0 : index
      %c0_144 = arith.constant 0 : index
      %157 = vector.load %arg5[%c2_141, %c1_142, %c0_143, %c0_144] : memref<3x2x16x16xbf16, #tpu.memory_space<vmem>>, vector<1x1x16x16xbf16>
      %158 = vector.shape_cast %157 : vector<1x1x16x16xbf16> to vector<16x16xbf16>
      %cst_145 = arith.constant dense<0.000000e+00> : vector<32x16xf32>
      %159 = tpu.matmul %156, %158, %cst_145 {dimension_numbers = #tpu.dot_dimension_numbers<[1], [0], [0], [1], [0, 0, 1, 1], [], []>} : vector<32x16xbf16>, vector<16x16xbf16>, vector<32x16xf32> -> vector<32x16xf32>
      %160 = arith.addf %155, %159 : vector<32x16xf32>
      %c2_146 = arith.constant 2 : index
      %c0_147 = arith.constant 0 : index
      %c0_148 = arith.constant 0 : index
      %c0_149 = arith.constant 0 : index
      %161 = vector.load %arg6[%c2_146, %c0_147, %c0_148, %c0_149] : memref<3x2x1x16xf32, #tpu.memory_space<vmem>>, vector<1x1x1x16xf32>
      %162 = vector.shape_cast %161 : vector<1x1x1x16xf32> to vector<1x16xf32>
      %163 = vector.broadcast %162 : vector<1x16xf32> to vector<32x16xf32>
      %164 = arith.mulf %160, %163 : vector<32x16xf32>
      %c2_150 = arith.constant 2 : index
      %c1_151 = arith.constant 1 : index
      %c0_152 = arith.constant 0 : index
      %c0_153 = arith.constant 0 : index
      %165 = vector.load %arg6[%c2_150, %c1_151, %c0_152, %c0_153] : memref<3x2x1x16xf32, #tpu.memory_space<vmem>>, vector<1x1x1x16xf32>
      %166 = vector.shape_cast %165 : vector<1x1x1x16xf32> to vector<1x16xf32>
      %167 = vector.broadcast %166 : vector<1x16xf32> to vector<32x16xf32>
      %168 = arith.addf %164, %167 : vector<32x16xf32>
      %cst_154 = arith.constant 0.000000e+00 : f32
      %169 = vector.broadcast %cst_154 : f32 to vector<32x16xf32>
      %170 = arith.maximumf %168, %169 : vector<32x16xf32>
      %171 = arith.addf %150, %170 : vector<32x16xf32>
      %c0_155 = arith.constant 0 : index
      %c0_156 = arith.constant 0 : index
      %172 = vector.load %arg10[%c0_155, %c0_156] : memref<32x16xf32, #tpu.memory_space<vmem>>, vector<32x16xf32>
      tpu.vector_store %arg10[%c0_155, %c0_156], %171 {strides = array<i32>} : memref<32x16xf32, #tpu.memory_space<vmem>>, vector<32x16xf32>,
    } else {
    }
    %c0 = arith.constant 0 : index
    %c0_1 = arith.constant 0 : index
    %3 = vector.load %arg10[%c0, %c0_1] : memref<32x16xf32, #tpu.memory_space<vmem>>, vector<32x16xf32>
    %c0_2 = arith.constant 0 : index
    %c0_3 = arith.constant 0 : index
    %4 = vector.load %arg3[%c0_2, %c0_3] : memref<8x2xi32, #tpu.memory_space<vmem>>, vector<8x2xi32>
    %5 = tpu.iota {dimensions = array<i32: 1>} : vector<8x32xi32>
    %6 = vector.extract_strided_slice %4 {offsets = [0, 0], sizes = [8, 1], strides = [1, 1]} : vector<8x2xi32> to vector<8x1xi32>
    %7 = vector.broadcast %6 : vector<8x1xi32> to vector<8x32xi32>
    %8 = arith.cmpi eq, %5, %7 : vector<8x32xi32>
    %9 = arith.extui %8 : vector<8x32xi1> to vector<8x32xi32>
    %10 = arith.sitofp %9 : vector<8x32xi32> to vector<8x32xf32>
    %11 = vector.extract_strided_slice %4 {offsets = [0, 1], sizes = [8, 1], strides = [1, 1]} : vector<8x2xi32> to vector<8x1xi32>
    %12 = vector.broadcast %11 : vector<8x1xi32> to vector<8x32xi32>
    %13 = arith.cmpi eq, %5, %12 : vector<8x32xi32>
    %14 = arith.extui %13 : vector<8x32xi1> to vector<8x32xi32>
    %15 = arith.sitofp %14 : vector<8x32xi32> to vector<8x32xf32>
    %cst = arith.constant dense<0.000000e+00> : vector<8x16xf32>
    %16 = tpu.matmul %10, %3, %cst {dimension_numbers = #tpu.dot_dimension_numbers<[1], [0], [0], [1], [0, 0, 1, 1], [], []>} : vector<8x32xf32>, vector<32x16xf32>, vector<8x16xf32> -> vector<8x16xf32>
    %cst_4 = arith.constant dense<0.000000e+00> : vector<8x16xf32>
    %17 = tpu.matmul %15, %3, %cst_4 {dimension_numbers = #tpu.dot_dimension_numbers<[1], [0], [0], [1], [0, 0, 1, 1], [], []>} : vector<8x32xf32>, vector<32x16xf32>, vector<8x16xf32> -> vector<8x16xf32>
    %cst_5 = arith.constant 0.000000e+00 : f32
    %18 = vector.broadcast %cst_5 : f32 to vector<8x256xf32>
    %c0_6 = arith.constant 0 : index
    %c0_7 = arith.constant 0 : index
    %19 = vector.load %arg11[%c0_6, %c0_7] : memref<8x256xf32, #tpu.memory_space<vmem>>, vector<8x256xf32>
    tpu.vector_store %arg11[%c0_6, %c0_7], %18 {strides = array<i32>} : memref<8x256xf32, #tpu.memory_space<vmem>>, vector<8x256xf32>,
    %c0_8 = arith.constant 0 : index
    %c0_9 = arith.constant 0 : index
    %20 = vector.load %arg11[%c0_8, %c0_9] : memref<8x256xf32, #tpu.memory_space<vmem>>, vector<8x16xf32>
    tpu.vector_store %arg11[%c0_8, %c0_9], %16 {strides = array<i32>} : memref<8x256xf32, #tpu.memory_space<vmem>>, vector<8x16xf32>,
    %c0_10 = arith.constant 0 : index
    %c16 = arith.constant 16 : index
    %21 = vector.load %arg11[%c0_10, %c16] : memref<8x256xf32, #tpu.memory_space<vmem>>, vector<8x16xf32>
    tpu.vector_store %arg11[%c0_10, %c16], %17 {strides = array<i32>} : memref<8x256xf32, #tpu.memory_space<vmem>>, vector<8x16xf32>,
    %c0_11 = arith.constant 0 : index
    %c0_12 = arith.constant 0 : index
    %22 = vector.load %arg4[%c0_11, %c0_12] : memref<8x8xf32, #tpu.memory_space<vmem>>, vector<8x8xf32>
    %c0_13 = arith.constant 0 : index
    %c32 = arith.constant 32 : index
    %23 = vector.load %arg11[%c0_13, %c32] : memref<8x256xf32, #tpu.memory_space<vmem>>, vector<8x8xf32>
    tpu.vector_store %arg11[%c0_13, %c32], %22 {strides = array<i32>} : memref<8x256xf32, #tpu.memory_space<vmem>>, vector<8x8xf32>,
    %c0_14 = arith.constant 0 : index
    %c0_15 = arith.constant 0 : index
    %24 = vector.load %arg11[%c0_14, %c0_15] : memref<8x256xf32, #tpu.memory_space<vmem>>, vector<8x256xf32>
    %c0_16 = arith.constant 0 : index
    %c0_17 = arith.constant 0 : index
    %c0_18 = arith.constant 0 : index
    %c0_19 = arith.constant 0 : index
    %25 = vector.load %arg7[%c0_16, %c0_17, %c0_18, %c0_19] : memref<5x2x1x256xf32, #tpu.memory_space<vmem>>, vector<1x1x1x256xf32>
    %26 = vector.shape_cast %25 : vector<1x1x1x256xf32> to vector<1x256xf32>
    %27 = vector.broadcast %26 : vector<1x256xf32> to vector<8x256xf32>
    %28 = arith.mulf %24, %27 : vector<8x256xf32>
    %c0_20 = arith.constant 0 : index
    %c1 = arith.constant 1 : index
    %c0_21 = arith.constant 0 : index
    %c0_22 = arith.constant 0 : index
    %29 = vector.load %arg7[%c0_20, %c1, %c0_21, %c0_22] : memref<5x2x1x256xf32, #tpu.memory_space<vmem>>, vector<1x1x1x256xf32>
    %30 = vector.shape_cast %29 : vector<1x1x1x256xf32> to vector<1x256xf32>
    %31 = vector.broadcast %30 : vector<1x256xf32> to vector<8x256xf32>
    %32 = arith.addf %28, %31 : vector<8x256xf32>
    %cst_23 = arith.constant 0.000000e+00 : f32
    %33 = vector.broadcast %cst_23 : f32 to vector<8x256xf32>
    %34 = arith.maximumf %32, %33 : vector<8x256xf32>
    %35 = arith.truncf %34 : vector<8x256xf32> to vector<8x256xbf16>
    %c0_24 = arith.constant 0 : index
    %c0_25 = arith.constant 0 : index
    %c0_26 = arith.constant 0 : index
    %36 = vector.load %arg8[%c0_24, %c0_25, %c0_26] : memref<5x256x128xbf16, #tpu.memory_space<vmem>>, vector<1x256x128xbf16>
    %37 = vector.shape_cast %36 : vector<1x256x128xbf16> to vector<256x128xbf16>
    %cst_27 = arith.constant dense<0.000000e+00> : vector<8x128xf32>
    %38 = tpu.matmul %35, %37, %cst_27 {dimension_numbers = #tpu.dot_dimension_numbers<[1], [0], [0], [1], [0, 0, 1, 1], [], []>} : vector<8x256xbf16>, vector<256x128xbf16>, vector<8x128xf32> -> vector<8x128xf32>
    %39 = vector.extract_strided_slice %38 {offsets = [0, 0], sizes = [8, 32], strides = [1, 1]} : vector<8x128xf32> to vector<8x32xf32>
    %c0_28 = arith.constant 0 : index
    %c40 = arith.constant 40 : index
    %40 = vector.load %arg11[%c0_28, %c40] : memref<8x256xf32, #tpu.memory_space<vmem>>, vector<8x32xf32>
    tpu.vector_store %arg11[%c0_28, %c40], %39 {strides = array<i32>} : memref<8x256xf32, #tpu.memory_space<vmem>>, vector<8x32xf32>,
    %c0_29 = arith.constant 0 : index
    %c0_30 = arith.constant 0 : index
    %41 = vector.load %arg11[%c0_29, %c0_30] : memref<8x256xf32, #tpu.memory_space<vmem>>, vector<8x256xf32>
    %c1_31 = arith.constant 1 : index
    %c0_32 = arith.constant 0 : index
    %c0_33 = arith.constant 0 : index
    %c0_34 = arith.constant 0 : index
    %42 = vector.load %arg7[%c1_31, %c0_32, %c0_33, %c0_34] : memref<5x2x1x256xf32, #tpu.memory_space<vmem>>, vector<1x1x1x256xf32>
    %43 = vector.shape_cast %42 : vector<1x1x1x256xf32> to vector<1x256xf32>
    %44 = vector.broadcast %43 : vector<1x256xf32> to vector<8x256xf32>
    %45 = arith.mulf %41, %44 : vector<8x256xf32>
    %c1_35 = arith.constant 1 : index
    %c1_36 = arith.constant 1 : index
    %c0_37 = arith.constant 0 : index
    %c0_38 = arith.constant 0 : index
    %46 = vector.load %arg7[%c1_35, %c1_36, %c0_37, %c0_38] : memref<5x2x1x256xf32, #tpu.memory_space<vmem>>, vector<1x1x1x256xf32>
    %47 = vector.shape_cast %46 : vector<1x1x1x256xf32> to vector<1x256xf32>
    %48 = vector.broadcast %47 : vector<1x256xf32> to vector<8x256xf32>
    %49 = arith.addf %45, %48 : vector<8x256xf32>
    %cst_39 = arith.constant 0.000000e+00 : f32
    %50 = vector.broadcast %cst_39 : f32 to vector<8x256xf32>
    %51 = arith.maximumf %49, %50 : vector<8x256xf32>
    %52 = arith.truncf %51 : vector<8x256xf32> to vector<8x256xbf16>
    %c1_40 = arith.constant 1 : index
    %c0_41 = arith.constant 0 : index
    %c0_42 = arith.constant 0 : index
    %53 = vector.load %arg8[%c1_40, %c0_41, %c0_42] : memref<5x256x128xbf16, #tpu.memory_space<vmem>>, vector<1x256x128xbf16>
    %54 = vector.shape_cast %53 : vector<1x256x128xbf16> to vector<256x128xbf16>
    %cst_43 = arith.constant dense<0.000000e+00> : vector<8x128xf32>
    %55 = tpu.matmul %52, %54, %cst_43 {dimension_numbers = #tpu.dot_dimension_numbers<[1], [0], [0], [1], [0, 0, 1, 1], [], []>} : vector<8x256xbf16>, vector<256x128xbf16>, vector<8x128xf32> -> vector<8x128xf32>
    %56 = vector.extract_strided_slice %55 {offsets = [0, 0], sizes = [8, 32], strides = [1, 1]} : vector<8x128xf32> to vector<8x32xf32>
    %c0_44 = arith.constant 0 : index
    %c72 = arith.constant 72 : index
    %57 = vector.load %arg11[%c0_44, %c72] : memref<8x256xf32, #tpu.memory_space<vmem>>, vector<8x32xf32>
    tpu.vector_store %arg11[%c0_44, %c72], %56 {strides = array<i32>} : memref<8x256xf32, #tpu.memory_space<vmem>>, vector<8x32xf32>,
    %c0_45 = arith.constant 0 : index
    %c0_46 = arith.constant 0 : index
    %58 = vector.load %arg11[%c0_45, %c0_46] : memref<8x256xf32, #tpu.memory_space<vmem>>, vector<8x256xf32>
    %c2 = arith.constant 2 : index
    %c0_47 = arith.constant 0 : index
    %c0_48 = arith.constant 0 : index
    %c0_49 = arith.constant 0 : index
    %59 = vector.load %arg7[%c2, %c0_47, %c0_48, %c0_49] : memref<5x2x1x256xf32, #tpu.memory_space<vmem>>, vector<1x1x1x256xf32>
    %60 = vector.shape_cast %59 : vector<1x1x1x256xf32> to vector<1x256xf32>
    %61 = vector.broadcast %60 : vector<1x256xf32> to vector<8x256xf32>
    %62 = arith.mulf %58, %61 : vector<8x256xf32>
    %c2_50 = arith.constant 2 : index
    %c1_51 = arith.constant 1 : index
    %c0_52 = arith.constant 0 : index
    %c0_53 = arith.constant 0 : index
    %63 = vector.load %arg7[%c2_50, %c1_51, %c0_52, %c0_53] : memref<5x2x1x256xf32, #tpu.memory_space<vmem>>, vector<1x1x1x256xf32>
    %64 = vector.shape_cast %63 : vector<1x1x1x256xf32> to vector<1x256xf32>
    %65 = vector.broadcast %64 : vector<1x256xf32> to vector<8x256xf32>
    %66 = arith.addf %62, %65 : vector<8x256xf32>
    %cst_54 = arith.constant 0.000000e+00 : f32
    %67 = vector.broadcast %cst_54 : f32 to vector<8x256xf32>
    %68 = arith.maximumf %66, %67 : vector<8x256xf32>
    %69 = arith.truncf %68 : vector<8x256xf32> to vector<8x256xbf16>
    %c2_55 = arith.constant 2 : index
    %c0_56 = arith.constant 0 : index
    %c0_57 = arith.constant 0 : index
    %70 = vector.load %arg8[%c2_55, %c0_56, %c0_57] : memref<5x256x128xbf16, #tpu.memory_space<vmem>>, vector<1x256x128xbf16>
    %71 = vector.shape_cast %70 : vector<1x256x128xbf16> to vector<256x128xbf16>
    %cst_58 = arith.constant dense<0.000000e+00> : vector<8x128xf32>
    %72 = tpu.matmul %69, %71, %cst_58 {dimension_numbers = #tpu.dot_dimension_numbers<[1], [0], [0], [1], [0, 0, 1, 1], [], []>} : vector<8x256xbf16>, vector<256x128xbf16>, vector<8x128xf32> -> vector<8x128xf32>
    %73 = vector.extract_strided_slice %72 {offsets = [0, 0], sizes = [8, 32], strides = [1, 1]} : vector<8x128xf32> to vector<8x32xf32>
    %c0_59 = arith.constant 0 : index
    %c104 = arith.constant 104 : index
    %74 = vector.load %arg11[%c0_59, %c104] : memref<8x256xf32, #tpu.memory_space<vmem>>, vector<8x32xf32>
    tpu.vector_store %arg11[%c0_59, %c104], %73 {strides = array<i32>} : memref<8x256xf32, #tpu.memory_space<vmem>>, vector<8x32xf32>,
    %c0_60 = arith.constant 0 : index
    %c0_61 = arith.constant 0 : index
    %75 = vector.load %arg11[%c0_60, %c0_61] : memref<8x256xf32, #tpu.memory_space<vmem>>, vector<8x256xf32>
    %c3 = arith.constant 3 : index
    %c0_62 = arith.constant 0 : index
    %c0_63 = arith.constant 0 : index
    %c0_64 = arith.constant 0 : index
    %76 = vector.load %arg7[%c3, %c0_62, %c0_63, %c0_64] : memref<5x2x1x256xf32, #tpu.memory_space<vmem>>, vector<1x1x1x256xf32>
    %77 = vector.shape_cast %76 : vector<1x1x1x256xf32> to vector<1x256xf32>
    %78 = vector.broadcast %77 : vector<1x256xf32> to vector<8x256xf32>
    %79 = arith.mulf %75, %78 : vector<8x256xf32>
    %c3_65 = arith.constant 3 : index
    %c1_66 = arith.constant 1 : index
    %c0_67 = arith.constant 0 : index
    %c0_68 = arith.constant 0 : index
    %80 = vector.load %arg7[%c3_65, %c1_66, %c0_67, %c0_68] : memref<5x2x1x256xf32, #tpu.memory_space<vmem>>, vector<1x1x1x256xf32>
    %81 = vector.shape_cast %80 : vector<1x1x1x256xf32> to vector<1x256xf32>
    %82 = vector.broadcast %81 : vector<1x256xf32> to vector<8x256xf32>
    %83 = arith.addf %79, %82 : vector<8x256xf32>
    %cst_69 = arith.constant 0.000000e+00 : f32
    %84 = vector.broadcast %cst_69 : f32 to vector<8x256xf32>
    %85 = arith.maximumf %83, %84 : vector<8x256xf32>
    %86 = arith.truncf %85 : vector<8x256xf32> to vector<8x256xbf16>
    %c3_70 = arith.constant 3 : index
    %c0_71 = arith.constant 0 : index
    %c0_72 = arith.constant 0 : index
    %87 = vector.load %arg8[%c3_70, %c0_71, %c0_72] : memref<5x256x128xbf16, #tpu.memory_space<vmem>>, vector<1x256x128xbf16>
    %88 = vector.shape_cast %87 : vector<1x256x128xbf16> to vector<256x128xbf16>
    %cst_73 = arith.constant dense<0.000000e+00> : vector<8x128xf32>
    %89 = tpu.matmul %86, %88, %cst_73 {dimension_numbers = #tpu.dot_dimension_numbers<[1], [0], [0], [1], [0, 0, 1, 1], [], []>} : vector<8x256xbf16>, vector<256x128xbf16>, vector<8x128xf32> -> vector<8x128xf32>
    %90 = vector.extract_strided_slice %89 {offsets = [0, 0], sizes = [8, 32], strides = [1, 1]} : vector<8x128xf32> to vector<8x32xf32>
    %c0_74 = arith.constant 0 : index
    %c136 = arith.constant 136 : index
    %91 = vector.load %arg11[%c0_74, %c136] : memref<8x256xf32, #tpu.memory_space<vmem>>, vector<8x32xf32>
    tpu.vector_store %arg11[%c0_74, %c136], %90 {strides = array<i32>} : memref<8x256xf32, #tpu.memory_space<vmem>>, vector<8x32xf32>,
    %c0_75 = arith.constant 0 : index
    %c0_76 = arith.constant 0 : index
    %92 = vector.load %arg11[%c0_75, %c0_76] : memref<8x256xf32, #tpu.memory_space<vmem>>, vector<8x256xf32>
    %c4 = arith.constant 4 : index
    %c0_77 = arith.constant 0 : index
    %c0_78 = arith.constant 0 : index
    %c0_79 = arith.constant 0 : index
    %93 = vector.load %arg7[%c4, %c0_77, %c0_78, %c0_79] : memref<5x2x1x256xf32, #tpu.memory_space<vmem>>, vector<1x1x1x256xf32>
    %94 = vector.shape_cast %93 : vector<1x1x1x256xf32> to vector<1x256xf32>
    %95 = vector.broadcast %94 : vector<1x256xf32> to vector<8x256xf32>
    %96 = arith.mulf %92, %95 : vector<8x256xf32>
    %c4_80 = arith.constant 4 : index
    %c1_81 = arith.constant 1 : index
    %c0_82 = arith.constant 0 : index
    %c0_83 = arith.constant 0 : index
    %97 = vector.load %arg7[%c4_80, %c1_81, %c0_82, %c0_83] : memref<5x2x1x256xf32, #tpu.memory_space<vmem>>, vector<1x1x1x256xf32>
    %98 = vector.shape_cast %97 : vector<1x1x1x256xf32> to vector<1x256xf32>
    %99 = vector.broadcast %98 : vector<1x256xf32> to vector<8x256xf32>
    %100 = arith.addf %96, %99 : vector<8x256xf32>
    %cst_84 = arith.constant 0.000000e+00 : f32
    %101 = vector.broadcast %cst_84 : f32 to vector<8x256xf32>
    %102 = arith.maximumf %100, %101 : vector<8x256xf32>
    %103 = arith.truncf %102 : vector<8x256xf32> to vector<8x256xbf16>
    %c4_85 = arith.constant 4 : index
    %c0_86 = arith.constant 0 : index
    %c0_87 = arith.constant 0 : index
    %104 = vector.load %arg8[%c4_85, %c0_86, %c0_87] : memref<5x256x128xbf16, #tpu.memory_space<vmem>>, vector<1x256x128xbf16>
    %105 = vector.shape_cast %104 : vector<1x256x128xbf16> to vector<256x128xbf16>
    %cst_88 = arith.constant dense<0.000000e+00> : vector<8x128xf32>
    %106 = tpu.matmul %103, %105, %cst_88 {dimension_numbers = #tpu.dot_dimension_numbers<[1], [0], [0], [1], [0, 0, 1, 1], [], []>} : vector<8x256xbf16>, vector<256x128xbf16>, vector<8x128xf32> -> vector<8x128xf32>
    %c0_89 = arith.constant 0 : index
    %c0_90 = arith.constant 0 : index
    %107 = vector.load %arg9[%c0_89, %c0_90] : memref<8x128xf32, #tpu.memory_space<vmem>>, vector<8x128xf32>
    tpu.vector_store %arg9[%c0_89, %c0_90], %106 {strides = array<i32>} : memref<8x128xf32, #tpu.memory_space<vmem>>, vector<8x128xf32>,
    return
  }
  func.func @transform_0(%arg0: i32) -> (i32, i32) {
    %c0_i32 = arith.constant 0 : i32
    %c0_i32_0 = arith.constant 0 : i32
    %c0_i32_1 = arith.constant 0 : i32
    return %c0_i32, %c0_i32_0 : i32, i32
  }
  func.func @transform_1(%arg0: i32) -> (i32, i32) {
    %c0_i32 = arith.constant 0 : i32
    %c0_i32_0 = arith.constant 0 : i32
    %c0_i32_1 = arith.constant 0 : i32
    return %c0_i32, %c0_i32_0 : i32, i32
  }
  func.func @transform_2(%arg0: i32) -> (i32, i32) {
    %c0_i32 = arith.constant 0 : i32
    %c0_i32_0 = arith.constant 0 : i32
    return %arg0, %c0_i32 : i32, i32
  }
  func.func @transform_3(%arg0: i32) -> (i32, i32) {
    %c0_i32 = arith.constant 0 : i32
    %c0_i32_0 = arith.constant 0 : i32
    return %arg0, %c0_i32 : i32, i32
  }
  func.func @transform_4(%arg0: i32) -> (i32, i32, i32, i32) {
    %c0_i32 = arith.constant 0 : i32
    %c0_i32_0 = arith.constant 0 : i32
    %c0_i32_1 = arith.constant 0 : i32
    %c0_i32_2 = arith.constant 0 : i32
    %c0_i32_3 = arith.constant 0 : i32
    return %c0_i32, %c0_i32_0, %c0_i32_1, %c0_i32_2 : i32, i32, i32, i32
  }
  func.func @transform_5(%arg0: i32) -> (i32, i32, i32, i32) {
    %c0_i32 = arith.constant 0 : i32
    %c0_i32_0 = arith.constant 0 : i32
    %c0_i32_1 = arith.constant 0 : i32
    %c0_i32_2 = arith.constant 0 : i32
    %c0_i32_3 = arith.constant 0 : i32
    return %c0_i32, %c0_i32_0, %c0_i32_1, %c0_i32_2 : i32, i32, i32, i32
  }
  func.func @transform_6(%arg0: i32) -> (i32, i32, i32, i32) {
    %c0_i32 = arith.constant 0 : i32
    %c0_i32_0 = arith.constant 0 : i32
    %c0_i32_1 = arith.constant 0 : i32
    %c0_i32_2 = arith.constant 0 : i32
    %c0_i32_3 = arith.constant 0 : i32
    return %c0_i32, %c0_i32_0, %c0_i32_1, %c0_i32_2 : i32, i32, i32, i32
  }
  func.func @transform_7(%arg0: i32) -> (i32, i32, i32) {
    %c0_i32 = arith.constant 0 : i32
    %c0_i32_0 = arith.constant 0 : i32
    %c0_i32_1 = arith.constant 0 : i32
    %c0_i32_2 = arith.constant 0 : i32
    return %c0_i32, %c0_i32_0, %c0_i32_1 : i32, i32, i32
  }
  func.func @transform_8(%arg0: i32) -> (i32, i32) {
    %c0_i32 = arith.constant 0 : i32
    %c0_i32_0 = arith.constant 0 : i32
    return %arg0, %c0_i32 : i32, i32
  }
}

</mosaic_0001>

<bundles_post_ra>
// kernel: model_forward.1
= control target key start
LH: loop header
LB: loop body
LE: loop exit
PB: predicated region body
PF: predicated region fallthrough
CT: control target
= control target key end

     0   :  { %13 = vsyncpa [#allocation5], 0  ;;  %s2455_s27 = smov 0   ;;  %s2637_s0 = inlined_call_operand.vmem [shape: f32[32,16], index: 0, kind: input, shape index: {}]   ;;  %s2638_s1 = inlined_call_operand.vmem [shape: f32[32,32], index: 1, kind: input, shape index: {}]   ;;  %s2639_s2 = inlined_call_operand.vmem [shape: s32[16,2], index: 2, kind: input, shape index: {}]   ;;  %s2640_s3 = inlined_call_operand.vmem [shape: f32[16,8], index: 3, kind: input, shape index: {}]   ;;  %s2641_s4 = inlined_call_operand.vmem [shape: bf16[3,2,16,16], index: 4, kind: input, shape index: {}]   ;;  %s2642_s5 = inlined_call_operand.vmem [shape: f32[3,2,1,16], index: 5, kind: input, shape index: {}]   ;;  %s2643_s6 = inlined_call_operand.vmem [shape: f32[5,2,1,256], index: 6, kind: input, shape index: {}]   ;;  %s2644_s7 = inlined_call_operand.hbm [shape: bf16[5,256,128], index: 7, kind: input, shape index: {}]   ;;  %s2645_s8 = inlined_call_operand.vmem [shape: f32[16,128], index: 8, kind: output, shape index: {}]  }
   0x1 LB: > { %s254_s30 = sshll.u32 %s2644_s7, 4  ;;  %s1821_s9 = sadd.s32 4294967295, %s2396_s27   ;;  %s2396_s27 = sphi %s2455_s27, %s19_s27   ;;  %s255_s30 = int_to_ptr.hbm [resolvable:$true] %s254_s30 }
   0x2   : > { %p1823_p0 = scmp.ge.s32.totalorder %s2396_s27, 1  ;;  %p228_p1 = scmp.lt.s32.totalorder %s2396_s27, 3 }
   0x3   : > { %p1824_p2 = scmp.ne.s32.totalorder %s1821_s9, 0  ;;  %p2325_p3 = scmp.eq.s32.totalorder %s1821_s9, 0 }
   0x4   : > { %p229_p4 = pnand %p1823_p0, %p228_p1  ;;  %s2398_s10 = smov [#allocation4]  }
   0x5   : > { %s256_s11 = sshll.u32 %s2398_s10, 4  ;;  %s2399_s12 = smov 64   ;;  %s257_s11 = int_to_ptr.vmem [resolvable:$true] %s256_s11 }
   0x6   : > { %p2321_p5 = pneg %p229_p4  ;;  %s2400_s13 = smov 4  }
   0x7   : > { %286 = sbr.rel (%p229_p4) target bundleno = 2481 (0x9b1), region = 52 }
   0x8   : > { %p2322_p6 = pnand %p2325_p3, %p2321_p5 }
   0xa   : > { %2324 = dma.hbm_to_vmem [thread:$0]  (!%p2322_p6), %s255_s30, 10240, %s257_s11, [#allocation5], %s2399_s12, %s2399_s12, %s2400_s13  }
   0xc   : > { %2391 = dma.done.wait (%p2325_p3), [#allocation5], 10240  }
   0xd   : > { %2393 = vsyncadd (%p2325_p3), [#allocation5], 4294957056  ;;  %p323_p7 = scmp.lt.s32.totalorder %s1821_s9, 1 }
   0xf   : > { %s324_s14 = scalar_select %p323_p7, %s1821_s9, 1 }
  0x10   : > { %339 = sbr.rel (%p1824_p2) target bundleno = 980 (0x3d4), region = 60 }
  0x11   : > { %s2466_s15 = sshll.u32 %s324_s14, 3 }
  0x12   : > { %s326_s18 = scalar_lea.vmem %s2639_s2, %s2466_s15  ;;  %s330_s21 = scalar_lea.vmem %s2640_s3, %s2466_s15 }
  0x13   : > { %s334_s24 = scalar_lea.vmem %s2645_s8, %s2466_s15 }
  0x15   : > { %v343_v0 = vld [vmem:[%s2637_s0 + $0x18] sm:$0xff]  ;;  %v342_v1 = vld [vmem:[%s2637_s0 + $0x10] sm:$0xff]  ;;  %v341_v3 = vld [vmem:[%s2637_s0 + $0x8] sm:$0xff]  ;;  %vm348_vm0 = vcmask 261120   ;;  %vm405_vm1 = vcmask 130048  }
  0x16   : > { %373 = vmatpush.msra.mxu0 %v343_v0  ;;  %v391_v2 = vpack.c.bf16 %v343_v0, %v342_v1  ;;  %v340_v4 = vld [vmem:[%s2637_s0] sm:$0xff]  ;;  %v2503_v7 = vld [vmem:[%s2638_s1 + $0x8] sm:$0xff]  ;;  %v2510_v8 = vld [vmem:[%s2638_s1 + $0x10] sm:$0xff] }
  0x17   : > { %v390_v5 = vpack.c.bf16 %v341_v3, %v340_v4  ;;  %v2496_v6 = vld [vmem:[%s2638_s1] sm:$0xff]  ;;  %v2517_v9 = vld [vmem:[%s2638_s1 + $0x18] sm:$0xff]  ;;  %v2231_v10 = vld [vmem:[%s2641_s4 + $0x8] sm:$0xff] }
  0x18   : > { %374 = vmatpush.msra.mxu0 %v342_v1  ;;  %419 = vmatpush.bf16.msra.mxu1 %v2231_v10  ;;  %v2230_v11 = vld [vmem:[%s2641_s4] sm:$0xff]  ;;  %v2232_v18 = vld [vmem:[%s2641_s4 + $0x10] sm:$0xff]  ;;  %v2233_v47 = vld [vmem:[%s2641_s4 + $0x18] sm:$0xff] }
  0x19   : > { %2316 = vmatpush.bf16.msra.mxu2 %v2231_v10  ;;  %v2347_v24 = vld [vmem:[%s2642_s5] ss:$0 sm:$0xff]  ;;  %v2348_v26 = vld [vmem:[%s2642_s5 + $0x1] ss:$0 sm:$0xff]  ;;  %v2349_v58 = vld [vmem:[%s2642_s5 + $0x2] ss:$0 sm:$0xff] }
  0x1a   : > { %375 = vmatpush.msra.mxu0 %v341_v3  ;;  %v2234_v54 = vld [vmem:[%s2641_s4 + $0x20] sm:$0xff] }
  0x1b   : > { %v2350_v61 = vld [vmem:[%s2642_s5 + $0x3] ss:$0 sm:$0xff] }
  0x1c   : > { %376 = vmatpush.msra.mxu0 %v340_v4  ;;  %541 = vmatpush.bf16.msrb.mxu1 %v2233_v47 }
  0x1d   : > { %1832 = vmatmul.msk.f32.vlgmr.msra.gmra.mxu0 %vm348_vm0, %v2496_v6  ;;  %450 = vmatpush.bf16.msrb.mxu2 %v2230_v11 }
  0x25   : > { %1833 = vmatmul.msk.f32.gmra.mxu0 %vm348_vm0, %v2503_v7 }
  0x2d   : > { %1834 = vmatmul.msk.f32.gmra.mxu0 %vm348_vm0, %v2510_v8 }
  0x35   : > { %1835 = vmatmul.msk.f32.gmra.mxu0 %vm348_vm0, %v2517_v9 }
  0x9a   : > { %v378_v12 = vpop.f32.mrf.mxu0 }
  0xa2   : > { %v381_v13 = vpop.f32.mrf.mxu0 }
  0xa3   : > { %v394_v14 = vpack.c.bf16 %v381_v13, %v378_v12 }
  0xa5   : > { %1842 = vmatmul.msk.bf16.vlgmr.msra.gmra.mxu1 %vm405_vm1, %v394_v14 }
  0xa6   : > { %699 = vmatpush.bf16.msra.mxu1 %v2234_v54 }
  0xaa   : > { %v384_v15 = vpop.f32.mrf.mxu0 }
  0xb2   : > { %v387_v16 = vpop.f32.mrf.mxu0 }
  0xb3   : > { %v395_v17 = vpack.c.bf16 %v387_v16, %v384_v15 }
  0xb5   : > { %1843 = vmatmul.msk.bf16.vlgmr.msra.gmra.mxu2 %vm405_vm1, %v395_v17 }
  0xb6   : > { %572 = vmatpush.bf16.msra.mxu2 %v2232_v18 }
  0xc5   : > { %1848 = vmatmul.msk.bf16.vlgmr.msrb.gmra.mxu2 %vm405_vm1, %v390_v5 }
  0xd5   : > { %1849 = vmatmul.msk.bf16.gmra.mxu2 %vm405_vm1, %v391_v2 }
 0x122   : > { %v421_v21 = vpop.f32.mrf.mxu1 }
 0x12a   : > { %v423_v27 = vpop.f32.mrf.mxu1 }
 0x138   : > { %v426_v19 = vpop.f32.mrf.mxu2 }
 0x140   : > { %v428_v20 = vpop.f32.mrf.mxu2 }
 0x148   : > { %v452_v22 = vpop.f32.mrf.mxu2 }
 0x149   : > { %v453_v23 = vadd.f32 %v452_v22, %v421_v21 }
 0x14b   : > { %v466_v25 = vmul.f32 %v2347_v24, %v453_v23 }
 0x14d   : > { %v475_v30 = vadd.f32 %v2348_v26, %v466_v25 }
 0x14f   : > { %v479_v33 = vmax.f32 %v475_v30, 0.0 }
 0x150   : > { %v454_v28 = vpop.f32.mrf.mxu2 }
 0x151   : > { %v455_v29 = vadd.f32 %v454_v28, %v423_v27  ;;  %v2235_v27 = vld [vmem:[%s2641_s4 + $0x28] sm:$0xff] }
 0x153   : > { %v467_v31 = vmul.f32 %v2347_v24, %v455_v29 }
 0x155   : > { %v476_v32 = vadd.f32 %v2348_v26, %v467_v31 }
 0x157   : > { %v480_v34 = vmax.f32 %v476_v32, 0.0 }
 0x158   : > { %v457_v35 = vpop.f32.mrf.mxu2 }
 0x159   : > { %v512_v36 = vpack.c.bf16 %v480_v34, %v479_v33  ;;  %v458_v37 = vadd.f32 %v457_v35, %v426_v19 }
 0x15b   : > { %1869 = vmatmul.msk.bf16.vlgmr.msra.gmra.mxu2 %vm405_vm1, %v512_v36  ;;  %v468_v38 = vmul.f32 %v2347_v24, %v458_v37 }
 0x15d   : > { %v477_v42 = vadd.f32 %v2348_v26, %v468_v38 }
 0x15f   : > { %v481_v45 = vmax.f32 %v477_v42, 0.0 }
 0x160   : > { %v459_v39 = vpop.f32.mrf.mxu2 }
 0x161   : > { %v460_v40 = vadd.f32 %v459_v39, %v428_v20 }
 0x163   : > { %v469_v41 = vmul.f32 %v2347_v24, %v460_v40 }
 0x165   : > { %v478_v43 = vadd.f32 %v2348_v26, %v469_v41 }
 0x167   : > { %v482_v44 = vmax.f32 %v478_v43, 0.0 }
 0x169   : > { %495 = vmatpush.msra.mxu3 %v482_v44  ;;  %v513_v46 = vpack.c.bf16 %v482_v44, %v481_v45 }
 0x16b   : > { %496 = vmatpush.msra.mxu3 %v481_v45  ;;  %1870 = vmatmul.msk.bf16.gmra.mxu2 %vm405_vm1, %v513_v46 }
 0x16d   : > { %497 = vmatpush.msra.mxu3 %v480_v34 }
 0x16f   : > { %498 = vmatpush.msra.mxu3 %v479_v33 }
 0x170   : > { %1851 = vmatmul.msk.f32.vlgmr.msra.gmra.mxu3 %vm348_vm0, %v2496_v6 }
 0x171   : > { %668 = vmatpush.bf16.msrb.mxu3 %v2235_v27 }
 0x178   : > { %1852 = vmatmul.msk.f32.gmra.mxu3 %vm348_vm0, %v2503_v7 }
 0x180   : > { %1853 = vmatmul.msk.f32.gmra.mxu3 %vm348_vm0, %v2510_v8 }
 0x188   : > { %1854 = vmatmul.msk.f32.gmra.mxu3 %vm348_vm0, %v2517_v9 }
 0x1de   : > { %v574_v55 = vpop.f32.mrf.mxu2 }
 0x1e6   : > { %v576_v59 = vpop.f32.mrf.mxu2 }
 0x1ee   : > { %v579_v4 = vpop.f32.mrf.mxu2 }
 0x1f3   : > { %v500_v48 = vpop.f32.mrf.mxu3 }
 0x1f6   : > { %v581_v16 = vpop.f32.mrf.mxu2 }
 0x1fb   : > { %v503_v49 = vpop.f32.mrf.mxu3 }
 0x1fc   : > { %v517_v50 = vpack.c.bf16 %v503_v49, %v500_v48 }
 0x1fe   : > { %1863 = vmatmul.msk.bf16.vlgmr.msrb.gmra.mxu1 %vm405_vm1, %v517_v50 }
 0x203   : > { %v506_v51 = vpop.f32.mrf.mxu3 }
 0x20b   : > { %v509_v52 = vpop.f32.mrf.mxu3 }
 0x20c   : > { %v518_v53 = vpack.c.bf16 %v509_v52, %v506_v51 }
 0x20e   : > { %1864 = vmatmul.msk.bf16.gmra.mxu1 %vm405_vm1, %v518_v53 }
 0x27b   : > { %v543_v56 = vpop.f32.mrf.mxu1 }
 0x27c   : > { %v575_v57 = vadd.f32 %v574_v55, %v543_v56 }
 0x27e   : > { %v589_v60 = vmul.f32 %v2349_v58, %v575_v57 }
 0x280   : > { %v598_v63 = vadd.f32 %v2350_v61, %v589_v60 }
 0x282   : > { %v602_v2 = vmax.f32 %v598_v63, 0.0 }
 0x283   : > { %v545_v62 = vpop.f32.mrf.mxu1 }
 0x284   : > { %v577_v0 = vadd.f32 %v576_v59, %v545_v62  ;;  %v606_v11 = vadd.f32 %v602_v2, %v479_v33 }
 0x286   : > { %v590_v1 = vmul.f32 %v2349_v58, %v577_v0 }
 0x288   : > { %v599_v3 = vadd.f32 %v2350_v61, %v590_v1 }
 0x28a   : > { %v603_v5 = vmax.f32 %v599_v3, 0.0 }
 0x28b   : > { %v548_v10 = vpop.f32.mrf.mxu1 }
 0x28c   : > { %v607_v12 = vadd.f32 %v603_v5, %v480_v34  ;;  %v580_v13 = vadd.f32 %v579_v4, %v548_v10  ;;  %v2352_v34 = vld [vmem:[%s2642_s5 + $0x5] ss:$0 sm:$0xff] }
 0x28e   : > { %v639_v14 = vpack.c.bf16 %v607_v12, %v606_v11  ;;  %v591_v15 = vmul.f32 %v2349_v58, %v580_v13 }
 0x290   : > { %1891 = vmatmul.msk.bf16.vlgmr.msra.gmra.mxu1 %vm405_vm1, %v639_v14  ;;  %v600_v18 = vadd.f32 %v2350_v61, %v591_v15 }
 0x292   : > { %v604_v21 = vmax.f32 %v600_v18, 0.0 }
 0x293   : > { %v550_v17 = vpop.f32.mrf.mxu1 }
 0x294   : > { %v582_v19 = vadd.f32 %v581_v16, %v550_v17  ;;  %v608_v25 = vadd.f32 %v604_v21, %v481_v45 }
 0x296   : > { %v592_v20 = vmul.f32 %v2349_v58, %v582_v19 }
 0x298   : > { %v601_v22 = vadd.f32 %v2350_v61, %v592_v20 }
 0x29a   : > { %v605_v23 = vmax.f32 %v601_v22, 0.0 }
 0x29c   : > { %v609_v24 = vadd.f32 %v605_v23, %v482_v44 }
 0x29e   : > { %622 = vmatpush.msrb.mxu0 %v609_v24  ;;  %v640_v26 = vpack.c.bf16 %v609_v24, %v608_v25 }
 0x2a0   : > { %623 = vmatpush.msrb.mxu0 %v608_v25  ;;  %1892 = vmatmul.msk.bf16.gmra.mxu1 %vm405_vm1, %v640_v26 }
 0x2a2   : > { %624 = vmatpush.msrb.mxu0 %v607_v12 }
 0x2a4   : > { %625 = vmatpush.msrb.mxu0 %v606_v11 }
 0x2a5   : > { %1873 = vmatmul.msk.f32.vlgmr.msrb.gmra.mxu0 %vm348_vm0, %v2496_v6 }
 0x2ad   : > { %1874 = vmatmul.msk.f32.gmra.mxu0 %vm348_vm0, %v2503_v7 }
 0x2b5   : > { %1875 = vmatmul.msk.f32.gmra.mxu0 %vm348_vm0, %v2510_v8  ;;  %v2351_v8 = vld [vmem:[%s2642_s5 + $0x4] ss:$0 sm:$0xff] }
 0x2bd   : > { %1876 = vmatmul.msk.f32.gmra.mxu0 %vm348_vm0, %v2517_v9 }
 0x30d   : > { %v701_v7 = vpop.f32.mrf.mxu1 }
 0x315   : > { %v703_v36 = vpop.f32.mrf.mxu1 }
 0x31d   : > { %v706_v44 = vpop.f32.mrf.mxu1 }
 0x322   : > { %v627_v28 = vpop.f32.mrf.mxu0 }
 0x325   : > { %v708_v52 = vpop.f32.mrf.mxu1 }
 0x32a   : > { %v630_v29 = vpop.f32.mrf.mxu0 }
 0x32b   : > { %v644_v30 = vpack.c.bf16 %v630_v29, %v627_v28 }
 0x32d   : > { %1885 = vmatmul.msk.bf16.vlgmr.msrb.gmra.mxu3 %vm405_vm1, %v644_v30 }
 0x332   : > { %v633_v6 = vpop.f32.mrf.mxu0 }
 0x33a   : > { %v636_v31 = vpop.f32.mrf.mxu0 }
 0x33b   : > { %v645_v32 = vpack.c.bf16 %v636_v31, %v633_v6 }
 0x33d   : > { %1886 = vmatmul.msk.bf16.gmra.mxu3 %vm405_vm1, %v645_v32 }
 0x3b0   : > { %v670_v9 = vpop.f32.mrf.mxu3 }
 0x3b1   : > { %v702_v33 = vadd.f32 %v701_v7, %v670_v9 }
 0x3b3   : > { %v716_v35 = vmul.f32 %v2351_v8, %v702_v33 }
 0x3b5   : > { %v725_v37 = vadd.f32 %v2352_v34, %v716_v35 }
 0x3b7   : > { %v729_v38 = vmax.f32 %v725_v37, 0.0 }
 0x3b8   : > { %v672_v39 = vpop.f32.mrf.mxu3 }
 0x3b9   : > { %v733_v40 = vadd.f32 %v729_v38, %v606_v11  ;;  %v704_v41 = vadd.f32 %v703_v36, %v672_v39 }
 0x3bb   : > { %737 = vst.msk [vmem:[#allocation2] sm:$0xff] %vm405_vm1, %v733_v40  ;;  %v717_v42 = vmul.f32 %v2351_v8, %v704_v41 }
 0x3bd   : > { %v726_v43 = vadd.f32 %v2352_v34, %v717_v42 }
 0x3bf   : > { %v730_v45 = vmax.f32 %v726_v43, 0.0 }
 0x3c0   : > { %v675_v46 = vpop.f32.mrf.mxu3 }
 0x3c1   : > { %v734_v47 = vadd.f32 %v730_v45, %v607_v12  ;;  %v707_v48 = vadd.f32 %v706_v44, %v675_v46 }
 0x3c3   : > { %738 = vst.msk [vmem:[#allocation2 + $0x8] sm:$0xff] %vm405_vm1, %v734_v47  ;;  %v718_v49 = vmul.f32 %v2351_v8, %v707_v48 }
 0x3c5   : > { %v727_v50 = vadd.f32 %v2352_v34, %v718_v49 }
 0x3c7   : > { %v731_v51 = vmax.f32 %v727_v50, 0.0 }
 0x3c8   : > { %v677_v53 = vpop.f32.mrf.mxu3 }
 0x3c9   : > { %v735_v54 = vadd.f32 %v731_v51, %v608_v25  ;;  %v709_v55 = vadd.f32 %v708_v52, %v677_v53 }
 0x3cb   : > { %739 = vst.msk [vmem:[#allocation2 + $0x10] sm:$0xff] %vm405_vm1, %v735_v54  ;;  %v719_v56 = vmul.f32 %v2351_v8, %v709_v55 }
 0x3cd   : > { %v728_v57 = vadd.f32 %v2352_v34, %v719_v56 }
 0x3cf   : > { %v732_v58 = vmax.f32 %v728_v57, 0.0 }
 0x3d1   : > { %v736_v59 = vadd.f32 %v732_v58, %v609_v24 }
 0x3d3   : > { %740 = vst.msk [vmem:[#allocation2 + $0x18] sm:$0xff] %vm405_vm1, %v736_v59 }
 0x3d4 PF: > { %v745_v60 = vld [vmem:[%s326_s18] sm:$0xff]  ;;  %v743_v62 = vld [vmem:[#allocation2 + $0x10] sm:$0xff]  ;;  %v2401_v63 = vmov 1   ;;  %v2402_v0 = vmov 0.0   ;;  %v2403_v1 = vmov 0   ;;  %v742_v2 = vld [vmem:[#allocation2 + $0x8] sm:$0xff]  ;;  %v746_v4 = vlaneseq }
 0x3d5   : > { %2353 = vset.pattern.permute.xlu0 %v2401_v63  ;;  %808 = vst [vmem:[#allocation3 + $0x8] sm:$0xff] %v2402_v0  ;;  %v741_v3 = vld [vmem:[#allocation2] sm:$0xff]  ;;  %vm760_vm2 = vcmask 261120   ;;  %v2251_v14 = vld [vmem:[#allocation4 + $0x78] sm:$0xff]  ;;  %v2249_v18 = vld [vmem:[#allocation4 + $0x68] sm:$0xff]  ;;  %s2404_s18 = smov 16  }
 0x3d6   : > { %755 = vperm.xlu0 %2353, %v745_v60   ;;  %807 = vst [vmem:[#allocation3] sm:$0xff] %v2402_v0  ;;  %v747_v5 = vand.u32 127, %v746_v4  ;;  %v2243_v15 = vld [vmem:[#allocation4 + $0x38] sm:$0xff]  ;;  %988 = vmatpush.bf16.msra.mxu3 %v2251_v14  ;;  %v2250_v16 = vld [vmem:[#allocation4 + $0x70] sm:$0xff]  ;;  %v2248_v19 = vld [vmem:[#allocation4 + $0x60] sm:$0xff]  ;;  %vm809_vm5 = vcmask 130048  }
 0x3d7   : > { %975 = vmatpush.bf16.msra.mxu2 %v2243_v15  ;;  %v2242_v17 = vld [vmem:[#allocation4 + $0x30] sm:$0xff]  ;;  %s2405_s14 = smov 32   ;;  %v2241_v23 = vld [vmem:[#allocation4 + $0x28] sm:$0xff]  ;;  %v2247_v24 = vld [vmem:[#allocation4 + $0x58] sm:$0xff]  ;;  %vm815_vm6 = vcmask 261248   ;;  %vm822_vm7 = vcmask 326912  }
 0x3d8   : > { %v817_v21 = vld [vmem:[%s330_s21] sm:$0xff]  ;;  %v2240_v25 = vld [vmem:[#allocation4 + $0x20] sm:$0xff]  ;;  %v2239_v29 = vld [vmem:[#allocation4 + $0x18] sm:$0xff]  ;;  %s2406_s20 = smov 40   ;;  %vm1005_vm8 = vcmask 589120   ;;  %s2407_s28 = smov 72  }
 0x3d9   : > { %v2246_v26 = vld [vmem:[#allocation4 + $0x50] sm:$0xff]  ;;  %v2245_v30 = vld [vmem:[#allocation4 + $0x48] sm:$0xff]  ;;  %v2244_v8 = vld [vmem:[#allocation4 + $0x40] sm:$0xff]  ;;  %vm1190_vm9 = vcmask 851520   ;;  %s2408_s12 = smov 104   ;;  %vm1375_vm10 = vcmask 1048384  }
 0x3da   : > { %v744_v61 = vld [vmem:[#allocation2 + $0x18] sm:$0xff]  ;;  %989 = vmatpush.bf16.msra.mxu3 %v2250_v16  ;;  %v826_v27 = vld [vmem:[%s2643_s6] sm:$0x3]  ;;  %v1899_v6 = vld [vmem:[%s2643_s6 + $0x2] sm:$0x3]  ;;  %vm1377_vm11 = vcmask 64512  }
 0x3db   : > { %799 = vmatpush.msra.mxu1 %v744_v61  ;;  %776 = vmatpush.msra.mxu0 %v744_v61  ;;  %v829_v28 = vperm.slane %v826_v27, 1  ;;  %v838_v32 = vperm.slane %v1899_v6, 1  ;;  %v2238_v7 = vld [vmem:[#allocation4 + $0x10] sm:$0xff]  ;;  %v2237_v34 = vld [vmem:[#allocation4 + $0x8] sm:$0xff]  ;;  %v2236_v36 = vld [vmem:[#allocation4] sm:$0xff]  ;;  %v828_v39 = vperm.slane %v826_v27, 0 }
 0x3dc   : > { %976 = vmatpush.bf16.msra.mxu2 %v2242_v17  ;;  %v837_v40 = vperm.slane %v1899_v6, 0  ;;  %v2267_v48 = vld [vmem:[#allocation4 + $0xf8] sm:$0xff]  ;;  %v2266_v50 = vld [vmem:[#allocation4 + $0xf0] sm:$0xff]  ;;  %v2265_v52 = vld [vmem:[#allocation4 + $0xe8] sm:$0xff]  ;;  %vm1562_vm12 = vcmask 326720  }
 0x3dd   : > { %800 = vmatpush.msra.mxu1 %v743_v62  ;;  %777 = vmatpush.msra.mxu0 %v743_v62  ;;  %v833_v31 = vmul.f32 0.0, %v829_v28  ;;  %v2259_v49 = vld [vmem:[#allocation4 + $0xb8] sm:$0xff]  ;;  %v2258_v51 = vld [vmem:[#allocation4 + $0xb0] sm:$0xff]  ;;  %v2257_v53 = vld [vmem:[#allocation4 + $0xa8] sm:$0xff] }
 0x3de   : > { %2354 = vset.pattern.permute.xlu0 %v2403_v1  ;;  %990 = vmatpush.bf16.msra.mxu3 %v2249_v18  ;;  %v2264_v54 = vld [vmem:[#allocation4 + $0xe0] sm:$0xff]  ;;  %v2263_v56 = vld [vmem:[#allocation4 + $0xd8] sm:$0xff]  ;;  %v2262_v57 = vld [vmem:[#allocation4 + $0xd0] sm:$0xff] }
 0x3df   : > { %749 = vperm.xlu0 %2354, %v745_v60   ;;  %801 = vmatpush.msra.mxu1 %v742_v2  ;;  %v842_v9 = vadd.f32 %v838_v32, %v833_v31  ;;  %v2256_v55 = vld [vmem:[#allocation4 + $0xa0] sm:$0xff]  ;;  %v1964_v61 = vld [vmem:[%s2643_s6 + $0x4] sm:$0x3]  ;;  %v1965_v1 = vld [vmem:[%s2643_s6 + $0x6] sm:$0x3] }
 0x3e0   : > { %778 = vmatpush.msra.mxu0 %v742_v2  ;;  %977 = vmatpush.bf16.msra.mxu2 %v2241_v23  ;;  %v1013_v62 = vperm.slane %v1964_v61, 1  ;;  %v2254_v4 = vld [vmem:[#allocation4 + $0x90] sm:$0xff]  ;;  %v2252_v14 = vld [vmem:[#allocation4 + $0x80] sm:$0xff]  ;;  %v1012_v16 = vperm.slane %v1964_v61, 0  ;;  %v1021_v17 = vperm.slane %v1965_v1, 0  ;;  %v2279_v32 = vld [vmem:[#allocation4 + $0x158] sm:$0xff] }
 0x3e1   : > { %802 = vmatpush.msra.mxu1 %v741_v3  ;;  %v844_v33 = vmax.f32 %v842_v9, 0.0  ;;  %v2282_v27 = vld [vmem:[#allocation4 + $0x170] sm:$0xff]  ;;  %v2280_v6 = vld [vmem:[#allocation4 + $0x160] sm:$0xff] }
 0x3e2   : > { %779 = vmatpush.msra.mxu0 %v741_v3  ;;  %991 = vmatpush.bf16.msra.mxu3 %v2248_v19  ;;  %v1017_v2 = vmul.f32 0.0, %v1013_v62  ;;  %v1022_v3 = vperm.slane %v1965_v1, 1  ;;  %v2274_v28 = vld [vmem:[#allocation4 + $0x130] sm:$0xff]  ;;  %v2272_v31 = vld [vmem:[#allocation4 + $0x120] sm:$0xff]  ;;  %v2297_v1 = vld [vmem:[#allocation4 + $0x1e8] sm:$0xff] }
 0x3e3   : > { %v846_v35 = vpack.c.bf16 %v844_v33, %v844_v33  ;;  %1173 = vmatpush.bf16.msrb.mxu1 %v2267_v48  ;;  %v2290_v61 = vld [vmem:[#allocation4 + $0x1b0] sm:$0xff] }
 0x3e4   : > { %978 = vmatpush.bf16.msra.mxu2 %v2240_v25  ;;  %1160 = vmatpush.bf16.msrb.mxu0 %v2259_v49  ;;  %v2283_v25 = vld [vmem:[#allocation4 + $0x178] sm:$0xff]  ;;  %v2298_v62 = vld [vmem:[#allocation4 + $0x1f0] sm:$0xff] }
 0x3e6   : > { %992 = vmatpush.bf16.msra.mxu3 %v2247_v24 }
 0x3e7   : > { %2355 = vset.pattern.permute.xlu0 %v2401_v63  ;;  %1174 = vmatpush.bf16.msrb.mxu1 %v2266_v50  ;;  %v2255_v63 = vld [vmem:[#allocation4 + $0x98] sm:$0xff] }
 0x3e8   : > { %979 = vmatpush.bf16.msra.mxu2 %v2239_v29  ;;  %1161 = vmatpush.bf16.msrb.mxu0 %v2258_v51  ;;  %v2281_v29 = vld [vmem:[#allocation4 + $0x168] sm:$0xff] }
 0x3ea   : > { %993 = vmatpush.bf16.msra.mxu3 %v2246_v26  ;;  %v2275_v26 = vld [vmem:[#allocation4 + $0x138] sm:$0xff] }
 0x3eb   : > { %1175 = vmatpush.bf16.msrb.mxu1 %v2265_v52 }
 0x3ec   : > { %980 = vmatpush.bf16.msra.mxu2 %v2238_v7  ;;  %1162 = vmatpush.bf16.msrb.mxu0 %v2257_v53  ;;  %v2278_v7 = vld [vmem:[#allocation4 + $0x150] sm:$0xff] }
 0x3ee   : > { %994 = vmatpush.bf16.msra.mxu3 %v2245_v30  ;;  %v2273_v30 = vld [vmem:[#allocation4 + $0x128] sm:$0xff] }
 0x3ef   : > { %1176 = vmatpush.bf16.msrb.mxu1 %v2264_v54 }
 0x3f0   : > { %981 = vmatpush.bf16.msra.mxu2 %v2237_v34  ;;  %1163 = vmatpush.bf16.msrb.mxu0 %v2256_v55  ;;  %v2030_v34 = vld [vmem:[%s2643_s6 + $0x8] sm:$0x3] }
 0x3f1   : > { %v1197_v49 = vperm.slane %v2030_v34, 0 }
 0x3f2   : > { %995 = vmatpush.bf16.msra.mxu3 %v2244_v8 }
 0x3f3   : > { %1177 = vmatpush.bf16.msrb.mxu1 %v2263_v56 }
 0x3f4   : > { %982 = vmatpush.bf16.msra.mxu2 %v2236_v36  ;;  %1164 = vmatpush.bf16.msrb.mxu0 %v2255_v63  ;;  %v2271_v36 = vld [vmem:[#allocation4 + $0x118] sm:$0xff]  ;;  %v2306_v63 = vld [vmem:[#allocation4 + $0x230] sm:$0xff] }
 0x3f5   : > { %996 = vmatmul.bf16.vlgmr.msra.gmra.mxu3 %v846_v35  ;;  %v1198_v35 = vperm.slane %v2030_v34, 1 }
 0x3f6   : > { %1358 = vmatpush.bf16.msrb.mxu3 %v2283_v25 }
 0x3f7   : > { %1178 = vmatpush.bf16.msrb.mxu1 %v2262_v57 }
 0x3f8   : > { %1165 = vmatpush.bf16.msrb.mxu0 %v2254_v4  ;;  %1345 = vmatpush.bf16.msrb.mxu2 %v2275_v26  ;;  %v2296_v4 = vld [vmem:[#allocation4 + $0x1e0] sm:$0xff]  ;;  %v2096_v26 = vld [vmem:[%s2643_s6 + $0xc] sm:$0x3] }
 0x3fa   : > { %1359 = vmatpush.bf16.msrb.mxu3 %v2282_v27  ;;  %v2162_v27 = vld [vmem:[%s2643_s6 + $0x10] sm:$0x3] }
 0x3fc   : > { %1346 = vmatpush.bf16.msrb.mxu2 %v2274_v28  ;;  %v2097_v28 = vld [vmem:[%s2643_s6 + $0xe] sm:$0x3] }
 0x3fe   : > { %1360 = vmatpush.bf16.msrb.mxu3 %v2281_v29  ;;  %v2163_v29 = vld [vmem:[%s2643_s6 + $0x12] sm:$0x3] }
 0x400   : > { %1347 = vmatpush.bf16.msrb.mxu2 %v2273_v30  ;;  %v1384_v30 = vperm.slane %v2096_v26, 0 }
 0x402   : > { %1361 = vmatpush.bf16.msrb.mxu3 %v2280_v6  ;;  %v1569_v6 = vperm.slane %v2162_v27, 0 }
 0x404   : > { %1348 = vmatpush.bf16.msrb.mxu2 %v2272_v31  ;;  %v1385_v31 = vperm.slane %v2096_v26, 1 }
 0x406   : > { %1362 = vmatpush.bf16.msrb.mxu3 %v2279_v32  ;;  %v1393_v32 = vperm.slane %v2097_v28, 0 }
 0x408   : > { %1349 = vmatpush.bf16.msrb.mxu2 %v2271_v36 }
 0x40a   : > { %1363 = vmatpush.bf16.msrb.mxu3 %v2278_v7  ;;  %v1578_v7 = vperm.slane %v2163_v29, 0 }
 0x448   : > { %v756_v10 = vpop.permute.xlu0 %755 }
 0x449   : > { %vm757_vm3 = vcmp.eq.s32.totalorder %v747_v5, %v756_v10  ;;  %v1026_v10 = vadd.f32 %v1022_v3, %v1017_v2  ;;  %v2305_v2 = vld [vmem:[#allocation4 + $0x228] sm:$0xff]  ;;  %v2288_v3 = vld [vmem:[#allocation4 + $0x1a0] sm:$0xff] }
 0x44a   : > { %v1896_v11 = vsel %vm757_vm3, 1.0, %v2402_v0 }
 0x44b   : > { %1898 = vmatmul.msk.f32.vlgmr.msra.gmra.mxu1 %vm760_vm2, %v1896_v11  ;;  %v1028_v11 = vmax.f32 %v1026_v10, 0.0 }
 0x451   : > { %v750_v12 = vpop.permute.xlu0 %749 }
 0x452   : > { %vm751_vm4 = vcmp.eq.s32.totalorder %v747_v5, %v750_v12  ;;  %v2260_v5 = vld [vmem:[#allocation4 + $0xc0] sm:$0xff]  ;;  %v2253_v12 = vld [vmem:[#allocation4 + $0x88] sm:$0xff] }
 0x453   : > { %v1895_v13 = vsel %vm751_vm4, 1.0, %v2402_v0  ;;  %v2261_v0 = vld [vmem:[#allocation4 + $0xc8] sm:$0xff]  ;;  %1166 = vmatpush.bf16.msrb.mxu0 %v2253_v12 }
 0x454   : > { %1897 = vmatmul.msk.f32.vlgmr.msra.gmra.mxu0 %vm760_vm2, %v1895_v13  ;;  %1179 = vmatpush.bf16.msrb.mxu1 %v2261_v0  ;;  %v1030_v13 = vpack.c.bf16 %v1028_v11, %v1028_v11  ;;  %v2289_v0 = vld [vmem:[#allocation4 + $0x1a8] sm:$0xff] }
 0x457   : > { %1167 = vmatpush.bf16.msrb.mxu0 %v2252_v14  ;;  %v2295_v14 = vld [vmem:[#allocation4 + $0x1d8] sm:$0xff] }
 0x458   : > { %1180 = vmatpush.bf16.msrb.mxu1 %v2260_v5  ;;  %v2304_v5 = vld [vmem:[#allocation4 + $0x220] sm:$0xff] }
 0x45b   : > { %1181 = vmatmul.bf16.vlgmr.msrb.gmra.mxu1 %v1030_v13  ;;  %v2287_v13 = vld [vmem:[#allocation4 + $0x198] sm:$0xff] }
 0x478   : > { %v997_v46 = vpop.f32.mrf.mxu3 }
 0x480   : > { %v999_v47 = vpop.f32.mrf.mxu3 }
 0x481   : > { %v2268_v47 = vld [vmem:[#allocation4 + $0x100] sm:$0xff] }
 0x4c8   : > { %v804_v20 = vpop.f32.mrf.mxu1 }
 0x4c9   : > { %812 = vrot.lane.b32.xlu1 %v804_v20, %s2404_s18 }
 0x4d1   : > { %819 = vrot.lane.b32.xlu1 %v817_v21, %s2405_s14  ;;  %v781_v22 = vpop.f32.mrf.mxu0 }
 0x4d2   : > { %810 = vst.msk [vmem:[#allocation3] sm:$0xff] %vm809_vm5, %v781_v22 }
 0x4d8   : > { %v1182_v23 = vpop.f32.mrf.mxu1 }
 0x4e0   : > { %v1184_v24 = vpop.f32.mrf.mxu1 }
 0x4e1   : > { %v2300_v24 = vld [vmem:[#allocation4 + $0x200] sm:$0xff] }
 0x53b   : > { %v813_v37 = vpop.permute.xlu1 %812 }
 0x53c   : > { %816 = vst.msk [vmem:[#allocation3] sm:$0xff] %vm815_vm6, %v813_v37  ;;  %v2277_v37 = vld [vmem:[#allocation4 + $0x148] sm:$0xff] }
 0x53d   : > { %1364 = vmatpush.bf16.msrb.mxu3 %v2277_v37 }
 0x543   : > { %v820_v38 = vpop.permute.xlu1 %819 }
 0x544   : > { %823 = vst.msk [vmem:[#allocation3] sm:$0xff] %vm822_vm7, %v820_v38  ;;  %v2031_v38 = vld [vmem:[%s2643_s6 + $0xa] sm:$0x3] }
 0x545   : > { %v1206_v50 = vperm.slane %v2031_v38, 0 }
 0x54b   : > { %v824_v41 = vld [vmem:[#allocation3] sm:$0xff] }
 0x54c   : > { %v832_v42 = vmul.f32 %v828_v39, %v824_v41  ;;  %v1202_v39 = vmul.f32 0.0, %v1198_v35  ;;  %v2270_v41 = vld [vmem:[#allocation4 + $0x110] sm:$0xff] }
 0x54d   : > { %1350 = vmatpush.bf16.msrb.mxu2 %v2270_v41 }
 0x54e   : > { %v841_v43 = vadd.f32 %v837_v40, %v832_v42  ;;  %v1207_v40 = vperm.slane %v2031_v38, 1  ;;  %v2276_v42 = vld [vmem:[#allocation4 + $0x140] sm:$0xff] }
 0x54f   : > { %1365 = vmatpush.bf16.msrb.mxu3 %v2276_v42 }
 0x550   : > { %v843_v44 = vmax.f32 %v841_v43, 0.0  ;;  %v1211_v43 = vadd.f32 %v1207_v40, %v1202_v39 }
 0x552   : > { %v845_v45 = vpack.c.bf16 %v843_v44, %v843_v44  ;;  %v1213_v44 = vmax.f32 %v1211_v43, 0.0 }
 0x554   : > { %983 = vmatmul.bf16.vlgmr.msra.gmra.mxu2 %v845_v45  ;;  %v2269_v45 = vld [vmem:[#allocation4 + $0x108] sm:$0xff] }
 0x555   : > { %1351 = vmatpush.bf16.msrb.mxu2 %v2269_v45 }
 0x559   : > { %1352 = vmatpush.bf16.msrb.mxu2 %v2268_v47  ;;  %v2314_v47 = vld [vmem:[#allocation4 + $0x270] sm:$0xff] }
 0x5d7   : > { %v984_v58 = vpop.f32.mrf.mxu2 }
 0x5d8   : > { %v998_v59 = vadd.f32 %v997_v46, %v984_v58  ;;  %v1215_v46 = vpack.c.bf16 %v1213_v44, %v1213_v44  ;;  %v2291_v58 = vld [vmem:[#allocation4 + $0x1b8] sm:$0xff] }
 0x5d9   : > { %1532 = vmatpush.bf16.msra.mxu0 %v2291_v58  ;;  %v2310_v58 = vld [vmem:[#allocation4 + $0x250] sm:$0xff] }
 0x5da   : > { %1002 = vrot.lane.b32.xlu2 %v998_v59, %s2406_s20  ;;  %1366 = vmatmul.bf16.vlgmr.msrb.gmra.mxu3 %v1215_v46  ;;  %v2299_v59 = vld [vmem:[#allocation4 + $0x1f8] sm:$0xff]  ;;  %s2409_s20 = smov 8  }
 0x5db   : > { %1545 = vmatpush.bf16.msra.mxu1 %v2299_v59  ;;  %v2315_v46 = vld [vmem:[#allocation4 + $0x278] sm:$0xff]  ;;  %v2309_v59 = vld [vmem:[#allocation4 + $0x248] sm:$0xff] }
 0x5dc   : > { %1730 = vmatpush.bf16.msra.mxu3 %v2315_v46 }
 0x5dd   : > { %1533 = vmatpush.bf16.msra.mxu0 %v2290_v61 }
 0x5df   : > { %v986_v60 = vpop.f32.mrf.mxu2  ;;  %1546 = vmatpush.bf16.msra.mxu1 %v2298_v62  ;;  %v1570_v62 = vperm.slane %v2162_v27, 1 }
 0x5e0   : > { %v2307_v60 = vld [vmem:[#allocation4 + $0x238] sm:$0xff]  ;;  %1731 = vmatpush.bf16.msra.mxu3 %v2314_v47 }
 0x5e1   : > { %1717 = vmatpush.bf16.msra.mxu2 %v2307_v60  ;;  %1534 = vmatpush.bf16.msra.mxu0 %v2289_v0  ;;  %v2308_v60 = vld [vmem:[#allocation4 + $0x240] sm:$0xff] }
 0x5e3   : > { %1547 = vmatpush.bf16.msra.mxu1 %v2297_v1 }
 0x5e5   : > { %1718 = vmatpush.bf16.msra.mxu2 %v2306_v63  ;;  %1535 = vmatpush.bf16.msra.mxu0 %v2288_v3  ;;  %v1579_v63 = vperm.slane %v2163_v29, 1 }
 0x5e7   : > { %1548 = vmatpush.bf16.msra.mxu1 %v2296_v4 }
 0x5e9   : > { %1719 = vmatpush.bf16.msra.mxu2 %v2305_v2  ;;  %1536 = vmatpush.bf16.msra.mxu0 %v2287_v13 }
 0x5eb   : > { %1549 = vmatpush.bf16.msra.mxu1 %v2295_v14 }
 0x5ed   : > { %1720 = vmatpush.bf16.msra.mxu2 %v2304_v5 }
 0x634   : > { %v1003_v15 = vpop.permute.xlu2 %1002 }
 0x635   : > { %1006 = vst.msk [vmem:[#allocation3] sm:$0xff] %vm1005_vm8, %v1003_v15  ;;  %v2303_v15 = vld [vmem:[#allocation4 + $0x218] sm:$0xff] }
 0x636   : > { %1721 = vmatpush.bf16.msra.mxu2 %v2303_v15 }
 0x63c   : > { %v1007_v18 = vld [vmem:[#allocation3] sm:$0xff] }
 0x63d   : > { %v1016_v19 = vmul.f32 %v1012_v16, %v1007_v18  ;;  %v2286_v16 = vld [vmem:[#allocation4 + $0x190] sm:$0xff] }
 0x63e   : > { %v2302_v18 = vld [vmem:[#allocation4 + $0x210] sm:$0xff]  ;;  %1537 = vmatpush.bf16.msra.mxu0 %v2286_v16 }
 0x63f   : > { %v1025_v20 = vadd.f32 %v1021_v17, %v1016_v19  ;;  %v2294_v17 = vld [vmem:[#allocation4 + $0x1d0] sm:$0xff]  ;;  %v2285_v19 = vld [vmem:[#allocation4 + $0x188] sm:$0xff]  ;;  %1722 = vmatpush.bf16.msra.mxu2 %v2302_v18 }
 0x640   : > { %1550 = vmatpush.bf16.msra.mxu1 %v2294_v17 }
 0x641   : > { %v1027_v21 = vmax.f32 %v1025_v20, 0.0  ;;  %v2293_v20 = vld [vmem:[#allocation4 + $0x1c8] sm:$0xff] }
 0x642   : > { %1538 = vmatpush.bf16.msra.mxu0 %v2285_v19 }
 0x643   : > { %v1029_v22 = vpack.c.bf16 %v1027_v21, %v1027_v21  ;;  %v2301_v21 = vld [vmem:[#allocation4 + $0x208] sm:$0xff] }
 0x644   : > { %1551 = vmatpush.bf16.msra.mxu1 %v2293_v20  ;;  %1723 = vmatpush.bf16.msra.mxu2 %v2301_v21 }
 0x645   : > { %1168 = vmatmul.bf16.vlgmr.msrb.gmra.mxu0 %v1029_v22  ;;  %v2284_v22 = vld [vmem:[#allocation4 + $0x180] sm:$0xff] }
 0x646   : > { %1539 = vmatpush.bf16.msra.mxu0 %v2284_v22 }
 0x648   : > { %1724 = vmatpush.bf16.msra.mxu2 %v2300_v24 }
 0x65d   : > { %v1367_v56 = vpop.f32.mrf.mxu3 }
 0x665   : > { %v1369_v57 = vpop.f32.mrf.mxu3 }
 0x666   : > { %v2311_v57 = vld [vmem:[#allocation4 + $0x258] sm:$0xff] }
 0x6c2   : > { %v1169_v8 = vpop.f32.mrf.mxu0 }
 0x6c3   : > { %v1183_v9 = vadd.f32 %v1182_v23, %v1169_v8  ;;  %v2292_v23 = vld [vmem:[#allocation4 + $0x1c0] sm:$0xff] }
 0x6c4   : > { %1552 = vmatpush.bf16.msra.mxu1 %v2292_v23 }
 0x6c5   : > { %1187 = vrot.lane.b32.xlu2 %v1183_v9, %s2407_s28  ;;  %v1394_v9 = vperm.slane %v2097_v28, 1 }
 0x6ca   : > { %v1171_v33 = vpop.f32.mrf.mxu0 }
 0x71f   : > { %v1188_v48 = vpop.permute.xlu2 %1187 }
 0x720   : > { %1191 = vst.msk [vmem:[#allocation3] sm:$0xff] %vm1190_vm9, %v1188_v48  ;;  %v2313_v48 = vld [vmem:[#allocation4 + $0x268] sm:$0xff] }
 0x721   : > { %1732 = vmatpush.bf16.msra.mxu3 %v2313_v48 }
 0x727   : > { %v1192_v51 = vld [vmem:[#allocation3] sm:$0xff] }
 0x728   : > { %v1201_v52 = vmul.f32 %v1197_v49, %v1192_v51  ;;  %v2312_v49 = vld [vmem:[#allocation4 + $0x260] sm:$0xff] }
 0x729   : > { %1733 = vmatpush.bf16.msra.mxu3 %v2312_v49 }
 0x72a   : > { %v1210_v53 = vadd.f32 %v1206_v50, %v1201_v52 }
 0x72c   : > { %v1212_v54 = vmax.f32 %v1210_v53, 0.0 }
 0x72d   : > { %1734 = vmatpush.bf16.msra.mxu3 %v2311_v57 }
 0x72e   : > { %v1214_v55 = vpack.c.bf16 %v1212_v54, %v1212_v54 }
 0x730   : > { %1353 = vmatmul.bf16.vlgmr.msrb.gmra.mxu2 %v1214_v55 }
 0x731   : > { %1735 = vmatpush.bf16.msra.mxu3 %v2310_v58 }
 0x735   : > { %1736 = vmatpush.bf16.msra.mxu3 %v2309_v59 }
 0x739   : > { %1737 = vmatpush.bf16.msra.mxu3 %v2308_v60 }
 0x7b3   : > { %v1354_v10 = vpop.f32.mrf.mxu2 }
 0x7b4   : > { %v1368_v11 = vadd.f32 %v1367_v56, %v1354_v10 }
 0x7b6   : > { %1372 = vrot.lane.b32.xlu1 %v1368_v11, %s2408_s12 }
 0x7bb   : > { %v1356_v12 = vpop.f32.mrf.mxu2 }
 0x828   : > { %v1373_v25 = vpop.permute.xlu1 %1372 }
 0x829   : > { %1376 = vst.msk [vmem:[#allocation3] sm:$0xff] %vm1375_vm10, %v1373_v25 }
 0x82a   : > { %1378 = vst.msk [vmem:[#allocation3 + $0x8] sm:$0xff] %vm1377_vm11, %v1373_v25 }
 0x830   : > { %v1379_v8 = vld [vmem:[#allocation3] sm:$0xff] }
 0x831   : > { %v1388_v33 = vmul.f32 %v1384_v30, %v1379_v8  ;;  %v1380_v34 = vld [vmem:[#allocation3 + $0x8] sm:$0xff]  ;;  %v1573_v35 = vmul.f32 %v1569_v6, %v1379_v8 }
 0x832   : > { %v1389_v36 = vmul.f32 %v1385_v31, %v1380_v34 }
 0x833   : > { %v1397_v37 = vadd.f32 %v1393_v32, %v1388_v33  ;;  %v1582_v38 = vadd.f32 %v1578_v7, %v1573_v35 }
 0x834   : > { %v1398_v39 = vadd.f32 %v1394_v9, %v1389_v36 }
 0x835   : > { %v1399_v40 = vmax.f32 %v1397_v37, 0.0  ;;  %v1584_v41 = vmax.f32 %v1582_v38, 0.0 }
 0x836   : > { %v1400_v42 = vmax.f32 %v1398_v39, 0.0 }
 0x837   : > { %v1401_v43 = vpack.c.bf16 %v1399_v40, %v1399_v40  ;;  %v1586_v44 = vpack.c.bf16 %v1584_v41, %v1584_v41 }
 0x838   : > { %v1402_v45 = vpack.c.bf16 %v1400_v42, %v1400_v42 }
 0x839   : > { %1540 = vmatmul.bf16.vlgmr.msra.gmra.mxu0 %v1401_v43  ;;  %1725 = vmatmul.bf16.vlgmr.msra.gmra.mxu2 %v1586_v44 }
 0x83a   : > { %1553 = vmatmul.bf16.vlgmr.msra.gmra.mxu1 %v1402_v45 }
 0x8b6   : > { %v1541_v50 = vpop.f32.mrf.mxu0 }
 0x8b7   : > { %v1554_v51 = vpop.f32.mrf.mxu1 }
 0x8b8   : > { %v1555_v52 = vadd.f32 %v1554_v51, %v1541_v50 }
 0x8ba   : > { %1559 = vrot.lane.b32.xlu2 %v1555_v52, %s2409_s20 }
 0x8bc   : > { %v1726_v53 = vpop.f32.mrf.mxu2 }
 0x8be   : > { %v1543_v54 = vpop.f32.mrf.mxu0 }
 0x8bf   : > { %v1556_v55 = vpop.f32.mrf.mxu1 }
 0x8c4   : > { %v1728_v56 = vpop.f32.mrf.mxu2 }
 0x914   : > { %v1560_v61 = vpop.permute.xlu2 %1559 }
 0x915   : > { %1563 = vst.msk [vmem:[#allocation3 + $0x8] sm:$0xff] %vm1562_vm12, %v1560_v61 }
 0x91c   : > { %v1565_v0 = vld [vmem:[#allocation3 + $0x8] sm:$0xff] }
 0x91d   : > { %v1574_v1 = vmul.f32 %v1570_v62, %v1565_v0 }
 0x91f   : > { %v1583_v2 = vadd.f32 %v1579_v63, %v1574_v1 }
 0x921   : > { %v1585_v3 = vmax.f32 %v1583_v2, 0.0 }
 0x923   : > { %v1587_v4 = vpack.c.bf16 %v1585_v3, %v1585_v3 }
 0x925   : > { %1738 = vmatmul.bf16.vlgmr.msra.gmra.mxu3 %v1587_v4 }
 0x9a8   : > { %v1739_v5 = vpop.f32.mrf.mxu3 }
 0x9a9   : > { %v1740_v10 = vadd.f32 %v1739_v5, %v1726_v53 }
 0x9ab   : > { %1743 = vst [vmem:[%s334_s24] sm:$0xff] %v1740_v10 }
 0x9b0   : > { %v1741_v11 = vpop.f32.mrf.mxu3 }
 0x9b1 PF: > { %s19_s27 = sadd.s32 1, %s2396_s27  }
 0x9b2   : > { %p16_p8 = scmp.ge.s32.totalorder %s19_s27, 4  }
 0x9b4   :  { %18 = sbr.rel (!%p16_p8) target bundleno = 1 (0x1), region = 117 }
 0x9b9   :  { %1763 = vsyncpa [#allocation5], 1 }
 0x9ba   :  { %1765 = vsyncpa [#allocation5 + $0x1], 1 }

</bundles_post_ra>
